<compile_context>
chip_gen: v6e
topology: v6e:2x2x1
jax: 0.10.0
libtpu: 0.0.40
codegen_flags: <defaults>
</compile_context>

<pallas_src>
import functools

import jax
import jax.numpy as jnp
from jax.experimental import pallas as pl
from jax.experimental.pallas import tpu as pltpu


_VMEM_LIMIT_BYTES = 48 * 1024 * 1024   # fits v7x's 64 MiB physical VMEM w/ headroom


def _pick_row_tile(n, target=512):
    """Largest divisor of n that is <= target and a multiple of 8; n if none."""
    if n <= target:
        return n
    for t in range(target, 7, -1):
        if n % t == 0 and t % 8 == 0:
            return t
    return n


# ----------------------------- Pallas kernels ------------------------------

def _conv1_proj_kernel(cols_ref, w1_ref, s1_ref, t1_ref, wproj_ref, bproj_ref,
                       featpc_ref, proj_ref):
    """Fused conv_p1|conv_c1 (one N=2*inter matmul) + bf|cf|df projections.

    cols:   (rows, 9*Cin) bf16 im2col tile (read from HBM once).
    featpc: (rows, 2*inter) f32  = [feat_p | feat_c]  (packed, lane-dense).
    proj:   (rows, 2*cb + inter) f32 = [bf | cf | df] (PAM 1x1 projections).
    """
    inter = w1_ref.shape[-1] // 2
    featpc = jnp.maximum(
        jnp.dot(cols_ref[...], w1_ref[...],
                preferred_element_type=jnp.float32) * s1_ref[...] + t1_ref[...],
        0.0)
    featpc_ref[...] = featpc
    feat_p = featpc[:, :inter].astype(jnp.bfloat16)
    proj_ref[...] = (jnp.dot(feat_p, wproj_ref[...],
                             preferred_element_type=jnp.float32) + bproj_ref[...])


def _pam_cam_kernel(featpc_ref, proj_ref, alpha_ref, beta_ref, out_ref,
                    m_sc, l_sc, acc_sc, ec_sc, *, key_tile):
    """Flash-tiled PAM + CAM for one (batch, query-tile); key tiles innermost.

    featpc_ref / proj_ref hold the FULL per-batch rows (block index constant
    over q/k -> VMEM-resident, DMA'd once per batch).  Output is the packed
    lane-dense [pam | cam] tile for the current query rows, written only at
    the last key step.
    """
    tq, inter = acc_sc.shape
    cb = (proj_ref.shape[-1] - inter) // 2
    q = pl.program_id(1)
    k = pl.program_id(2)

    @pl.when(k == 0)
    def _():
        m_sc[...] = jnp.full_like(m_sc, -jnp.inf)
        l_sc[...] = jnp.zeros_like(l_sc)
        acc_sc[...] = jnp.zeros_like(acc_sc)
        ec_sc[...] = jnp.zeros_like(ec_sc)

    q_off = q * tq
    k_off = k * key_tile
    if tq % 8 == 0:
        q_off = pl.multiple_of(q_off, 8)
    if key_tile % 8 == 0:
        k_off = pl.multiple_of(k_off, 8)

    # ----- Position attention (PAM): online-softmax step over this key tile -
    proj_q = proj_ref[pl.ds(q_off, tq), :]
    proj_k = proj_ref[pl.ds(k_off, key_tile), :]
    bf_q = proj_q[:, :cb].astype(jnp.bfloat16)                 # (tq, cb)
    cf_k = proj_k[:, cb:2 * cb].astype(jnp.bfloat16)           # (tk, cb)
    df_k = proj_k[:, 2 * cb:].astype(jnp.bfloat16)             # (tk, inter)

    s = jax.lax.dot_general(bf_q, cf_k, (((1,), (1,)), ((), ())),
                            preferred_element_type=jnp.float32)   # (tq, tk)
    m_new = jnp.maximum(m_sc[...], jnp.max(s, axis=-1, keepdims=True))
    corr = jnp.exp(m_sc[...] - m_new)
    p = jnp.exp(s - m_new)
    l_sc[...] = corr * l_sc[...] + jnp.sum(p, axis=-1, keepdims=True)
    acc_sc[...] = corr * acc_sc[...] + jnp.dot(
        p.astype(jnp.bfloat16), df_k, preferred_element_type=jnp.float32)
    m_sc[...] = m_new

    # ----- Channel attention (CAM): accumulate channel energy over rows -----
    fk = featpc_ref[pl.ds(k_off, key_tile), :]
    featc_k = fk[:, inter:]                                     # (tk, inter) f32
    ec_sc[...] += jax.lax.dot_general(featc_k, featc_k,
                                      (((0,), (0,)), ((), ())),
                                      preferred_element_type=jnp.float32)

    @pl.when(k == pl.num_programs(2) - 1)
    def _():
        featpc_q = featpc_ref[pl.ds(q_off, tq), :]
        feat_p_q = featpc_q[:, :inter]
        feat_c_q = featpc_q[:, inter:]

        # PAM finalize: normalize AFTER the PV matmul (post-matmul scaling).
        pam = (alpha_ref[0]
               * (acc_sc[...] * pl.reciprocal(l_sc[...], approx=True))
               + feat_p_q)

        # CAM finalize: softmax(rowmax - E) == softmax(rowmin(E) - E).
        ec = ec_sc[...]
        stab = jnp.min(ec, axis=-1, keepdims=True) - ec
        pc = jnp.exp(stab)
        attn_c = pc * pl.reciprocal(jnp.sum(pc, axis=-1, keepdims=True),
                                    approx=True)
        # out[p, c] = sum_c2 feat_c[p, c2] * attn_c[c, c2]
        out_c = jax.lax.dot_general(feat_c_q, attn_c, (((1,), (1,)), ((), ())),
                                    preferred_element_type=jnp.float32)
        cam = beta_ref[0] * out_c + feat_c_q

        out_ref[...] = jnp.concatenate([pam, cam], axis=-1)


def _tail_kernel(cp_ref, cc_ref,
                 wp2_ref, sp2_ref, tp2_ref,
                 wc2_ref, sc2_ref, tc2_ref,
                 o_ref):
    """Fused conv_p2 + conv_c2 + fusion add for one (batch, row-tile)."""
    out_p = jnp.maximum(
        jnp.dot(cp_ref[...], wp2_ref[...],
                preferred_element_type=jnp.float32) * sp2_ref[...] + tp2_ref[...],
        0.0)
    out_c = jnp.maximum(
        jnp.dot(cc_ref[...], wc2_ref[...],
                preferred_element_type=jnp.float32) * sc2_ref[...] + tc2_ref[...],
        0.0)
    o_ref[...] = out_p + out_c


# ----------------------------- Pallas wrappers ------------------------------

def conv1_proj(cols1, w1, s1, t1, wproj, bproj, *, row_tile):
    B, HW, K9 = cols1.shape
    inter2 = w1.shape[1]
    cbp = wproj.shape[1]
    nr = HW // row_tile
    return pl.pallas_call(
        _conv1_proj_kernel,
        out_shape=(jax.ShapeDtypeStruct((B, HW, inter2), jnp.float32),
                   jax.ShapeDtypeStruct((B, HW, cbp), jnp.float32)),
        grid=(B, nr),
        in_specs=[
            pl.BlockSpec((None, row_tile, K9), lambda b, r: (b, r, 0)),   # cols1
            pl.BlockSpec((K9, inter2), lambda b, r: (0, 0)),              # w1
            pl.BlockSpec((1, inter2), lambda b, r: (0, 0)),               # scale1
            pl.BlockSpec((1, inter2), lambda b, r: (0, 0)),               # shift1
            pl.BlockSpec((inter2 // 2, cbp), lambda b, r: (0, 0)),        # wproj
            pl.BlockSpec((1, cbp), lambda b, r: (0, 0)),                  # bproj
        ],
        out_specs=[pl.BlockSpec((None, row_tile, inter2), lambda b, r: (b, r, 0)),
                   pl.BlockSpec((None, row_tile, cbp), lambda b, r: (b, r, 0))],
        compiler_params=pltpu.CompilerParams(
            dimension_semantics=("parallel", "parallel"),
            vmem_limit_bytes=_VMEM_LIMIT_BYTES),
    )(cols1, w1, s1, t1, wproj, bproj)


def pam_cam(featpc, proj, alpha, beta, *, row_tile):
    B, HW, inter2 = featpc.shape
    cbp = proj.shape[-1]
    inter = inter2 // 2
    nt = HW // row_tile
    kernel = functools.partial(_pam_cam_kernel, key_tile=row_tile)
    return pl.pallas_call(
        kernel,
        out_shape=jax.ShapeDtypeStruct((B, HW, inter2), jnp.float32),
        grid=(B, nt, nt),
        in_specs=[
            # Full per-batch rows resident in VMEM (block index constant in q,k).
            pl.BlockSpec((None, HW, inter2), lambda b, q, k: (b, 0, 0)),  # featpc
            pl.BlockSpec((None, HW, cbp), lambda b, q, k: (b, 0, 0)),     # proj
            pl.BlockSpec(memory_space=pltpu.MemorySpace.SMEM),            # alpha
            pl.BlockSpec(memory_space=pltpu.MemorySpace.SMEM),            # beta
        ],
        out_specs=pl.BlockSpec((None, row_tile, inter2),
                               lambda b, q, k: (b, q, 0)),
        scratch_shapes=[
            pltpu.VMEM((row_tile, 1), jnp.float32),        # running max
            pltpu.VMEM((row_tile, 1), jnp.float32),        # running sum
            pltpu.VMEM((row_tile, inter), jnp.float32),    # PAM accumulator
            pltpu.VMEM((inter, inter), jnp.float32),       # CAM channel energy
        ],
        compiler_params=pltpu.CompilerParams(
            dimension_semantics=("parallel", "parallel", "arbitrary"),
            vmem_limit_bytes=_VMEM_LIMIT_BYTES),
    )(featpc, proj, alpha, beta)


def dahead_tail(cols_p2, cols_c2, wp2, sp2, tp2, wc2, sc2, tc2, *, row_tile):
    B, HW, K9 = cols_p2.shape
    N = wp2.shape[1]
    nr = HW // row_tile
    return pl.pallas_call(
        _tail_kernel,
        out_shape=jax.ShapeDtypeStruct((B, HW, N), jnp.float32),
        grid=(B, nr),
        in_specs=[
            pl.BlockSpec((None, row_tile, K9), lambda b, r: (b, r, 0)),   # cols_p2
            pl.BlockSpec((None, row_tile, K9), lambda b, r: (b, r, 0)),   # cols_c2
            pl.BlockSpec((K9, N), lambda b, r: (0, 0)),                   # w_p2
            pl.BlockSpec((1, N), lambda b, r: (0, 0)),                    # p2_scale
            pl.BlockSpec((1, N), lambda b, r: (0, 0)),                    # p2_shift
            pl.BlockSpec((K9, N), lambda b, r: (0, 0)),                   # w_c2
            pl.BlockSpec((1, N), lambda b, r: (0, 0)),                    # c2_scale
            pl.BlockSpec((1, N), lambda b, r: (0, 0)),                    # c2_shift
        ],
        out_specs=pl.BlockSpec((None, row_tile, N), lambda b, r: (b, r, 0)),
        compiler_params=pltpu.CompilerParams(
            dimension_semantics=("parallel", "parallel"),
            vmem_limit_bytes=_VMEM_LIMIT_BYTES),
    )(cols_p2, cols_c2, wp2, sp2, tp2, wc2, sc2, tc2)


# ------------------------------ glue (plain JAX) ----------------------------

def im2col_3x3(x_nhwc, dtype=jnp.bfloat16):
    # [B, H, W, C] -> [B, H*W, 9*C], patch order (ky, kx, c), pad=1 (SAME).
    # Emitted in bf16: halves the HBM traffic of the largest streaming operand.
    B, H, W, C = x_nhwc.shape
    xp = jnp.pad(x_nhwc.astype(dtype), ((0, 0), (1, 1), (1, 1), (0, 0)))
    cols = []
    for ky in range(3):
        for kx in range(3):
            cols.append(xp[:, ky:ky + H, kx:kx + W, :])
    return jnp.concatenate(cols, axis=-1).reshape(B, H * W, 9 * C)


def init_params(key, in_channels):
    inter = in_channels // 4
    ks = list(jax.random.split(key, 24))

    def w(k, shape, s=0.05):
        return jax.random.normal(k, shape, jnp.float32) * s

    def bn(kg, kb, n, eps=1e-5):
        gamma = 1.0 + 0.1 * jax.random.normal(kg, (n,), jnp.float32)
        beta = 0.1 * jax.random.normal(kb, (n,), jnp.float32)
        mean = jnp.zeros((n,), jnp.float32)   # running stats (inference mode)
        var = jnp.ones((n,), jnp.float32)
        scale = gamma / jnp.sqrt(var + eps)
        shift = beta - mean * scale
        return scale.reshape(1, n), shift.reshape(1, n)

    p = {}
    p['w_p1'] = w(ks[0], (9 * in_channels, inter))          # conv_p1 3x3 (HWIO flat)
    p['p1_scale'], p['p1_shift'] = bn(ks[1], ks[2], inter)
    p['w_c1'] = w(ks[3], (9 * in_channels, inter))          # conv_c1 3x3
    p['c1_scale'], p['c1_shift'] = bn(ks[4], ks[5], inter)
    cb = inter // 8
    p['w_b'] = w(ks[6], (inter, cb)); p['b_b'] = w(ks[7], (1, cb))
    p['w_c'] = w(ks[8], (inter, cb)); p['b_c'] = w(ks[9], (1, cb))
    p['w_d'] = w(ks[10], (inter, inter)); p['b_d'] = w(ks[11], (1, inter))
    # torch init is zeros(1); use a nonzero deterministic value so the
    # attention branches actually contribute to the output in the test.
    p['alpha'] = jnp.array([0.5], jnp.float32)
    p['beta_cam'] = jnp.array([0.5], jnp.float32)
    p['w_p2'] = w(ks[12], (9 * inter, 256))                 # conv_p2 3x3
    p['p2_scale'], p['p2_shift'] = bn(ks[13], ks[14], 256)
    p['w_c2'] = w(ks[15], (9 * inter, 256))                 # conv_c2 3x3
    p['c2_scale'], p['c2_shift'] = bn(ks[16], ks[17], 256)
    return p


@jax.jit
def dahead_forward(x_nchw, params):
    B, Cin, H, W = x_nchw.shape
    inter = Cin // 4
    HW = H * W
    row_tile = _pick_row_tile(HW)

    x = jnp.transpose(x_nchw, (0, 2, 3, 1))                 # NHWC
    cols1 = im2col_3x3(x)                                   # [B, HW, 9*Cin] bf16

    # Fused conv_p1|conv_c1 weight (one N=2*inter matmul) + packed projections
    # [w_b | w_c | w_d], all pre-cast to bf16 (affine params stay f32).
    w1 = jnp.concatenate([params['w_p1'], params['w_c1']], axis=1).astype(jnp.bfloat16)
    s1 = jnp.concatenate([params['p1_scale'], params['c1_scale']], axis=1)
    t1 = jnp.concatenate([params['p1_shift'], params['c1_shift']], axis=1)
    wproj = jnp.concatenate([params['w_b'], params['w_c'], params['w_d']],
                            axis=1).astype(jnp.bfloat16)
    bproj = jnp.concatenate([params['b_b'], params['b_c'], params['b_d']], axis=1)

    # Kernel 1: conv_p1|conv_c1 + bf/cf/df projections (row-tiled, parallel).
    featpc, proj = conv1_proj(cols1, w1, s1, t1, wproj, bproj, row_tile=row_tile)

    # Kernel 2: flash-tiled PAM + CAM, packed lane-dense [pam | cam] output.
    pamcam = pam_cam(featpc, proj, params['alpha'], params['beta_cam'],
                     row_tile=row_tile)

    pam = pamcam[..., :inter].reshape(B, H, W, inter)
    cam = pamcam[..., inter:].reshape(B, H, W, inter)
    cols_p2 = im2col_3x3(pam)                               # bf16
    cols_c2 = im2col_3x3(cam)                               # bf16

    # Kernel 3: conv_p2 + conv_c2 + fusion add (row-tiled, parallel).
    out = dahead_tail(cols_p2, cols_c2,
                      params['w_p2'].astype(jnp.bfloat16),
                      params['p2_scale'], params['p2_shift'],
                      params['w_c2'].astype(jnp.bfloat16),
                      params['c2_scale'], params['c2_shift'],
                      row_tile=row_tile)
    return jnp.transpose(out.reshape(B, H, W, 256), (0, 3, 1, 2))   # back to NCHW


# --------------------------- pure-JAX reference -----------------------------

def reference_forward(x, params):
    B, Cin, H, W = x.shape
    inter = Cin // 4
    hp = jax.lax.Precision.HIGHEST

    def conv3x3(inp, w_flat, cin, cout):
        w = w_flat.reshape(3, 3, cin, cout)
        return jax.lax.conv_general_dilated(
            inp, w, (1, 1), 'SAME',
            dimension_numbers=('NCHW', 'HWIO', 'NCHW'), precision=hp)

    def conv1x1(inp, w_kn, b):
        w = w_kn.reshape(1, 1, *w_kn.shape)
        y = jax.lax.conv_general_dilated(
            inp, w, (1, 1), 'SAME',
            dimension_numbers=('NCHW', 'HWIO', 'NCHW'), precision=hp)
        return y + b.reshape(1, -1, 1, 1)

    def affine_relu(inp, scale, shift):
        return jnp.maximum(inp * scale.reshape(1, -1, 1, 1)
                           + shift.reshape(1, -1, 1, 1), 0.0)

    p1 = affine_relu(conv3x3(x, params['w_p1'], Cin, inter),
                     params['p1_scale'], params['p1_shift'])
    c1 = affine_relu(conv3x3(x, params['w_c1'], Cin, inter),
                     params['c1_scale'], params['c1_shift'])

    fb = conv1x1(p1, params['w_b'], params['b_b']).reshape(B, -1, H * W)
    fc = conv1x1(p1, params['w_c'], params['b_c']).reshape(B, -1, H * W)
    fd = conv1x1(p1, params['w_d'], params['b_d']).reshape(B, -1, H * W)
    energy = jnp.einsum('bkp,bkq->bpq', fb, fc, precision=hp)
    attn = jax.nn.softmax(energy, axis=-1)
    pam = jnp.einsum('bcq,bpq->bcp', fd, attn, precision=hp).reshape(B, inter, H, W)
    pam = params['alpha'][0] * pam + p1

    xv = c1.reshape(B, inter, H * W)
    e2 = jnp.einsum('bcp,bdp->bcd', xv, xv, precision=hp)
    e2 = jnp.max(e2, axis=-1, keepdims=True) - e2
    a2 = jax.nn.softmax(e2, axis=-1)
    cam = jnp.einsum('bcd,bdp->bcp', a2, xv, precision=hp).reshape(B, inter, H, W)
    cam = params['beta_cam'][0] * cam + c1

    p2 = affine_relu(conv3x3(pam, params['w_p2'], inter, 256),
                     params['p2_scale'], params['p2_shift'])
    c2 = affine_relu(conv3x3(cam, params['w_c2'], inter, 256),
                     params['c2_scale'], params['c2_shift'])
    return p2 + c2


# ----------------------------------- main ------------------------------------

if __name__ == "__main__":
    key = jax.random.PRNGKey(0)
    kx, kp = jax.random.split(key)

    B, Cin, H, W = 2, 64, 8, 8        # in_channels=64 -> inter=16, inter//8=2
    x = jax.random.normal(kx, (B, Cin, H, W), jnp.float32)
    params = init_params(kp, Cin)

    out = jax.block_until_ready(dahead_forward(x, params))
    ref = jax.block_until_ready(reference_forward(x, params))

    assert out.shape == (B, 256, H, W), out.shape
    assert bool(jnp.all(jnp.isfinite(out))), "non-finite output"
    err = float(jnp.max(jnp.abs(out - ref)))
    assert err < 1e-1, f"mismatch vs reference: max abs diff = {err}"
    print("KERNEL_OK")
</pallas_src>

<mosaic_0001>
module attributes {stable_mosaic.version = 11 : i64} {
  func.func @_conv1_proj_kernel(%arg0: i32, %arg1: i32, %arg2: memref<1x64x576xbf16, #tpu.memory_space<vmem>>, %arg3: memref<576x32xbf16, #tpu.memory_space<vmem>>, %arg4: memref<1x32xf32, #tpu.memory_space<vmem>>, %arg5: memref<1x32xf32, #tpu.memory_space<vmem>>, %arg6: memref<16x20xbf16, #tpu.memory_space<vmem>>, %arg7: memref<1x20xf32, #tpu.memory_space<vmem>>, %arg8: memref<1x64x32xf32, #tpu.memory_space<vmem>>, %arg9: memref<1x64x20xf32, #tpu.memory_space<vmem>>) attributes {dimension_semantics = [#tpu.dimension_semantics<parallel>, #tpu.dimension_semantics<parallel>], iteration_bounds = array<i64: 2, 1>, scalar_prefetch = 0 : i64, scratch_operands = 0 : i64, tpu.core_type = #tpu.core_type<tc>, window_params = [{transform_indices = @transform_0, window_bounds = array<i64: 1, 64, 576>}, {pipeline_mode = #tpu.pipeline_mode<synchronous>, transform_indices = @transform_1, window_bounds = array<i64: 576, 32>}, {pipeline_mode = #tpu.pipeline_mode<synchronous>, transform_indices = @transform_2, window_bounds = array<i64: 1, 32>}, {pipeline_mode = #tpu.pipeline_mode<synchronous>, transform_indices = @transform_3, window_bounds = array<i64: 1, 32>}, {pipeline_mode = #tpu.pipeline_mode<synchronous>, transform_indices = @transform_4, window_bounds = array<i64: 16, 20>}, {pipeline_mode = #tpu.pipeline_mode<synchronous>, transform_indices = @transform_5, window_bounds = array<i64: 1, 20>}, {transform_indices = @transform_6, window_bounds = array<i64: 1, 64, 32>}, {transform_indices = @transform_7, window_bounds = array<i64: 1, 64, 20>}]} {
    %c0 = arith.constant 0 : index
    %c0_0 = arith.constant 0 : index
    %c0_1 = arith.constant 0 : index
    %0 = vector.load %arg2[%c0, %c0_0, %c0_1] : memref<1x64x576xbf16, #tpu.memory_space<vmem>>, vector<1x64x576xbf16>
    %1 = vector.shape_cast %0 : vector<1x64x576xbf16> to vector<64x576xbf16>
    %c0_2 = arith.constant 0 : index
    %c0_3 = arith.constant 0 : index
    %2 = vector.load %arg3[%c0_2, %c0_3] : memref<576x32xbf16, #tpu.memory_space<vmem>>, vector<576x32xbf16>
    %cst = arith.constant dense<0.000000e+00> : vector<64x32xf32>
    %3 = tpu.matmul %1, %2, %cst {dimension_numbers = #tpu.dot_dimension_numbers<[1], [0], [0], [1], [0, 0, 1, 1], [], []>} : vector<64x576xbf16>, vector<576x32xbf16>, vector<64x32xf32> -> vector<64x32xf32>
    %c0_4 = arith.constant 0 : index
    %c0_5 = arith.constant 0 : index
    %4 = vector.load %arg4[%c0_4, %c0_5] : memref<1x32xf32, #tpu.memory_space<vmem>>, vector<1x32xf32>
    %5 = vector.broadcast %4 : vector<1x32xf32> to vector<64x32xf32>
    %6 = arith.mulf %3, %5 : vector<64x32xf32>
    %c0_6 = arith.constant 0 : index
    %c0_7 = arith.constant 0 : index
    %7 = vector.load %arg5[%c0_6, %c0_7] : memref<1x32xf32, #tpu.memory_space<vmem>>, vector<1x32xf32>
    %8 = vector.broadcast %7 : vector<1x32xf32> to vector<64x32xf32>
    %9 = arith.addf %6, %8 : vector<64x32xf32>
    %cst_8 = arith.constant 0.000000e+00 : f32
    %10 = vector.broadcast %cst_8 : f32 to vector<64x32xf32>
    %11 = arith.maximumf %9, %10 : vector<64x32xf32>
    %c0_9 = arith.constant 0 : index
    %c0_10 = arith.constant 0 : index
    %c0_11 = arith.constant 0 : index
    %12 = vector.load %arg8[%c0_9, %c0_10, %c0_11] : memref<1x64x32xf32, #tpu.memory_space<vmem>>, vector<1x64x32xf32>
    %13 = vector.shape_cast %12 : vector<1x64x32xf32> to vector<64x32xf32>
    %14 = vector.shape_cast %11 : vector<64x32xf32> to vector<1x64x32xf32>
    tpu.vector_store %arg8[%c0_9, %c0_10, %c0_11], %14 {strides = array<i32>} : memref<1x64x32xf32, #tpu.memory_space<vmem>>, vector<1x64x32xf32>,
    %15 = vector.extract_strided_slice %11 {offsets = [0, 0], sizes = [64, 16], strides = [1, 1]} : vector<64x32xf32> to vector<64x16xf32>
    %16 = arith.truncf %15 : vector<64x16xf32> to vector<64x16xbf16>
    %c0_12 = arith.constant 0 : index
    %c0_13 = arith.constant 0 : index
    %17 = vector.load %arg6[%c0_12, %c0_13] : memref<16x20xbf16, #tpu.memory_space<vmem>>, vector<16x20xbf16>
    %cst_14 = arith.constant dense<0.000000e+00> : vector<64x20xf32>
    %18 = tpu.matmul %16, %17, %cst_14 {dimension_numbers = #tpu.dot_dimension_numbers<[1], [0], [0], [1], [0, 0, 1, 1], [], []>} : vector<64x16xbf16>, vector<16x20xbf16>, vector<64x20xf32> -> vector<64x20xf32>
    %c0_15 = arith.constant 0 : index
    %c0_16 = arith.constant 0 : index
    %19 = vector.load %arg7[%c0_15, %c0_16] : memref<1x20xf32, #tpu.memory_space<vmem>>, vector<1x20xf32>
    %20 = vector.broadcast %19 : vector<1x20xf32> to vector<64x20xf32>
    %21 = arith.addf %18, %20 : vector<64x20xf32>
    %c0_17 = arith.constant 0 : index
    %c0_18 = arith.constant 0 : index
    %c0_19 = arith.constant 0 : index
    %22 = vector.load %arg9[%c0_17, %c0_18, %c0_19] : memref<1x64x20xf32, #tpu.memory_space<vmem>>, vector<1x64x20xf32>
    %23 = vector.shape_cast %22 : vector<1x64x20xf32> to vector<64x20xf32>
    %24 = vector.shape_cast %21 : vector<64x20xf32> to vector<1x64x20xf32>
    tpu.vector_store %arg9[%c0_17, %c0_18, %c0_19], %24 {strides = array<i32>} : memref<1x64x20xf32, #tpu.memory_space<vmem>>, vector<1x64x20xf32>,
    return
  }
  func.func @transform_0(%arg0: i32, %arg1: i32) -> (i32, i32, i32) {
    %c0_i32 = arith.constant 0 : i32
    %c0_i32_0 = arith.constant 0 : i32
    return %arg0, %arg1, %c0_i32 : i32, i32, i32
  }
  func.func @transform_1(%arg0: i32, %arg1: i32) -> (i32, i32) {
    %c0_i32 = arith.constant 0 : i32
    %c0_i32_0 = arith.constant 0 : i32
    %c0_i32_1 = arith.constant 0 : i32
    return %c0_i32, %c0_i32_0 : i32, i32
  }
  func.func @transform_2(%arg0: i32, %arg1: i32) -> (i32, i32) {
    %c0_i32 = arith.constant 0 : i32
    %c0_i32_0 = arith.constant 0 : i32
    %c0_i32_1 = arith.constant 0 : i32
    return %c0_i32, %c0_i32_0 : i32, i32
  }
  func.func @transform_3(%arg0: i32, %arg1: i32) -> (i32, i32) {
    %c0_i32 = arith.constant 0 : i32
    %c0_i32_0 = arith.constant 0 : i32
    %c0_i32_1 = arith.constant 0 : i32
    return %c0_i32, %c0_i32_0 : i32, i32
  }
  func.func @transform_4(%arg0: i32, %arg1: i32) -> (i32, i32) {
    %c0_i32 = arith.constant 0 : i32
    %c0_i32_0 = arith.constant 0 : i32
    %c0_i32_1 = arith.constant 0 : i32
    return %c0_i32, %c0_i32_0 : i32, i32
  }
  func.func @transform_5(%arg0: i32, %arg1: i32) -> (i32, i32) {
    %c0_i32 = arith.constant 0 : i32
    %c0_i32_0 = arith.constant 0 : i32
    %c0_i32_1 = arith.constant 0 : i32
    return %c0_i32, %c0_i32_0 : i32, i32
  }
  func.func @transform_6(%arg0: i32, %arg1: i32) -> (i32, i32, i32) {
    %c0_i32 = arith.constant 0 : i32
    %c0_i32_0 = arith.constant 0 : i32
    return %arg0, %arg1, %c0_i32 : i32, i32, i32
  }
  func.func @transform_7(%arg0: i32, %arg1: i32) -> (i32, i32, i32) {
    %c0_i32 = arith.constant 0 : i32
    %c0_i32_0 = arith.constant 0 : i32
    return %arg0, %arg1, %c0_i32 : i32, i32, i32
  }
}

module attributes {stable_mosaic.version = 11 : i64} {
  func.func @_pam_cam_kernel(%arg0: i32, %arg1: i32, %arg2: i32, %arg3: memref<1x64x32xf32, #tpu.memory_space<vmem>>, %arg4: memref<1x64x20xf32, #tpu.memory_space<vmem>>, %arg5: memref<1xf32, #tpu.memory_space<smem>>, %arg6: memref<1xf32, #tpu.memory_space<smem>>, %arg7: memref<1x64x32xf32, #tpu.memory_space<vmem>>, %arg8: memref<64x1xf32, #tpu.memory_space<vmem>>, %arg9: memref<64x1xf32, #tpu.memory_space<vmem>>, %arg10: memref<64x16xf32, #tpu.memory_space<vmem>>, %arg11: memref<16x16xf32, #tpu.memory_space<vmem>>) attributes {dimension_semantics = [#tpu.dimension_semantics<parallel>, #tpu.dimension_semantics<parallel>, #tpu.dimension_semantics<arbitrary>], iteration_bounds = array<i64: 2, 1, 1>, scalar_prefetch = 0 : i64, scratch_operands = 4 : i64, tpu.core_type = #tpu.core_type<tc>, window_params = [{transform_indices = @transform_0, window_bounds = array<i64: 1, 64, 32>}, {transform_indices = @transform_1, window_bounds = array<i64: 1, 64, 20>}, {transform_indices = @transform_2, window_bounds = array<i64: 1>}, {transform_indices = @transform_3, window_bounds = array<i64: 1>}, {transform_indices = @transform_4, window_bounds = array<i64: 1, 64, 32>}]} {
    %c0_i32 = arith.constant 0 : i32
    %0 = arith.cmpi eq, %arg2, %c0_i32 : i32
    %1 = arith.extui %0 : i1 to i32
    %c0_i32_0 = arith.constant 0 : i32
    %2 = arith.cmpi ne, %1, %c0_i32_0 : i32
    scf.if %2 {
      %cst_31 = arith.constant 0xFF800000 : f32
      %55 = vector.broadcast %cst_31 : f32 to vector<64x1xf32>
      %c0_32 = arith.constant 0 : index
      %c0_33 = arith.constant 0 : index
      %56 = vector.load %arg8[%c0_32, %c0_33] : memref<64x1xf32, #tpu.memory_space<vmem>>, vector<64x1xf32>
      tpu.vector_store %arg8[%c0_32, %c0_33], %55 {strides = array<i32>} : memref<64x1xf32, #tpu.memory_space<vmem>>, vector<64x1xf32>,
      %cst_34 = arith.constant 0.000000e+00 : f32
      %57 = vector.broadcast %cst_34 : f32 to vector<64x1xf32>
      %c0_35 = arith.constant 0 : index
      %c0_36 = arith.constant 0 : index
      %58 = vector.load %arg9[%c0_35, %c0_36] : memref<64x1xf32, #tpu.memory_space<vmem>>, vector<64x1xf32>
      tpu.vector_store %arg9[%c0_35, %c0_36], %57 {strides = array<i32>} : memref<64x1xf32, #tpu.memory_space<vmem>>, vector<64x1xf32>,
      %cst_37 = arith.constant 0.000000e+00 : f32
      %59 = vector.broadcast %cst_37 : f32 to vector<64x16xf32>
      %c0_38 = arith.constant 0 : index
      %c0_39 = arith.constant 0 : index
      %60 = vector.load %arg10[%c0_38, %c0_39] : memref<64x16xf32, #tpu.memory_space<vmem>>, vector<64x16xf32>
      tpu.vector_store %arg10[%c0_38, %c0_39], %59 {strides = array<i32>} : memref<64x16xf32, #tpu.memory_space<vmem>>, vector<64x16xf32>,
      %cst_40 = arith.constant 0.000000e+00 : f32
      %61 = vector.broadcast %cst_40 : f32 to vector<16x16xf32>
      %c0_41 = arith.constant 0 : index
      %c0_42 = arith.constant 0 : index
      %62 = vector.load %arg11[%c0_41, %c0_42] : memref<16x16xf32, #tpu.memory_space<vmem>>, vector<16x16xf32>
      tpu.vector_store %arg11[%c0_41, %c0_42], %61 {strides = array<i32>} : memref<16x16xf32, #tpu.memory_space<vmem>>, vector<16x16xf32>,
    } else {
    }
    %c64_i32 = arith.constant 64 : i32
    %3 = arith.muli %arg1, %c64_i32 : i32
    %c64_i32_1 = arith.constant 64 : i32
    %4 = arith.muli %arg2, %c64_i32_1 : i32
    %5 = tpu.assume_multiple %3, 8 : i32
    %6 = tpu.assume_multiple %4, 8 : i32
    %c0 = arith.constant 0 : index
    %7 = arith.index_cast %5 : i32 to index
    %c0_2 = arith.constant 0 : index
    %8 = vector.load %arg4[%c0, %7, %c0_2] : memref<1x64x20xf32, #tpu.memory_space<vmem>>, vector<1x64x20xf32>
    %9 = vector.shape_cast %8 : vector<1x64x20xf32> to vector<64x20xf32>
    %c0_3 = arith.constant 0 : index
    %10 = arith.index_cast %6 : i32 to index
    %c0_4 = arith.constant 0 : index
    %11 = vector.load %arg4[%c0_3, %10, %c0_4] : memref<1x64x20xf32, #tpu.memory_space<vmem>>, vector<1x64x20xf32>
    %12 = vector.shape_cast %11 : vector<1x64x20xf32> to vector<64x20xf32>
    %13 = vector.extract_strided_slice %9 {offsets = [0, 0], sizes = [64, 2], strides = [1, 1]} : vector<64x20xf32> to vector<64x2xf32>
    %14 = arith.truncf %13 : vector<64x2xf32> to vector<64x2xbf16>
    %15 = vector.extract_strided_slice %12 {offsets = [0, 2], sizes = [64, 2], strides = [1, 1]} : vector<64x20xf32> to vector<64x2xf32>
    %16 = arith.truncf %15 : vector<64x2xf32> to vector<64x2xbf16>
    %17 = vector.extract_strided_slice %12 {offsets = [0, 4], sizes = [64, 16], strides = [1, 1]} : vector<64x20xf32> to vector<64x16xf32>
    %18 = arith.truncf %17 : vector<64x16xf32> to vector<64x16xbf16>
    %cst = arith.constant dense<0.000000e+00> : vector<64x64xf32>
    %19 = tpu.matmul %14, %16, %cst {dimension_numbers = #tpu.dot_dimension_numbers<[1], [1], [0], [0], [0, 0, 1, 0], [], []>} : vector<64x2xbf16>, vector<64x2xbf16>, vector<64x64xf32> -> vector<64x64xf32>
    %c0_5 = arith.constant 0 : index
    %c0_6 = arith.constant 0 : index
    %20 = vector.load %arg8[%c0_5, %c0_6] : memref<64x1xf32, #tpu.memory_space<vmem>>, vector<64x1xf32>
    %cst_7 = arith.constant dense<0xFF800000> : vector<64xf32>
    %21 = vector.multi_reduction <maximumf>, %19, %cst_7 [1] : vector<64x64xf32> to vector<64xf32>
    %22 = vector.shape_cast %21 : vector<64xf32> to vector<64x1xf32>
    %23 = arith.maximumf %20, %22 : vector<64x1xf32>
    %c0_8 = arith.constant 0 : index
    %c0_9 = arith.constant 0 : index
    %24 = vector.load %arg8[%c0_8, %c0_9] : memref<64x1xf32, #tpu.memory_space<vmem>>, vector<64x1xf32>
    %25 = arith.subf %24, %23 : vector<64x1xf32>
    %26 = math.exp %25 : vector<64x1xf32>
    %27 = vector.broadcast %23 : vector<64x1xf32> to vector<64x64xf32>
    %28 = arith.subf %19, %27 : vector<64x64xf32>
    %29 = math.exp %28 : vector<64x64xf32>
    %c0_10 = arith.constant 0 : index
    %c0_11 = arith.constant 0 : index
    %30 = vector.load %arg9[%c0_10, %c0_11] : memref<64x1xf32, #tpu.memory_space<vmem>>, vector<64x1xf32>
    %31 = arith.mulf %26, %30 : vector<64x1xf32>
    %cst_12 = arith.constant dense<0.000000e+00> : vector<64xf32>
    %32 = vector.multi_reduction <add>, %29, %cst_12 [1] : vector<64x64xf32> to vector<64xf32>
    %33 = vector.shape_cast %32 : vector<64xf32> to vector<64x1xf32>
    %34 = arith.addf %31, %33 : vector<64x1xf32>
    %c0_13 = arith.constant 0 : index
    %c0_14 = arith.constant 0 : index
    %35 = vector.load %arg9[%c0_13, %c0_14] : memref<64x1xf32, #tpu.memory_space<vmem>>, vector<64x1xf32>
    tpu.vector_store %arg9[%c0_13, %c0_14], %34 {strides = array<i32>} : memref<64x1xf32, #tpu.memory_space<vmem>>, vector<64x1xf32>,
    %c0_15 = arith.constant 0 : index
    %c0_16 = arith.constant 0 : index
    %36 = vector.load %arg10[%c0_15, %c0_16] : memref<64x16xf32, #tpu.memory_space<vmem>>, vector<64x16xf32>
    %37 = vector.broadcast %26 : vector<64x1xf32> to vector<64x16xf32>
    %38 = arith.mulf %37, %36 : vector<64x16xf32>
    %39 = arith.truncf %29 : vector<64x64xf32> to vector<64x64xbf16>
    %cst_17 = arith.constant dense<0.000000e+00> : vector<64x16xf32>
    %40 = tpu.matmul %39, %18, %cst_17 {dimension_numbers = #tpu.dot_dimension_numbers<[1], [0], [0], [1], [0, 0, 1, 1], [], []>} : vector<64x64xbf16>, vector<64x16xbf16>, vector<64x16xf32> -> vector<64x16xf32>
    %41 = arith.addf %38, %40 : vector<64x16xf32>
    %c0_18 = arith.constant 0 : index
    %c0_19 = arith.constant 0 : index
    %42 = vector.load %arg10[%c0_18, %c0_19] : memref<64x16xf32, #tpu.memory_space<vmem>>, vector<64x16xf32>
    tpu.vector_store %arg10[%c0_18, %c0_19], %41 {strides = array<i32>} : memref<64x16xf32, #tpu.memory_space<vmem>>, vector<64x16xf32>,
    %c0_20 = arith.constant 0 : index
    %c0_21 = arith.constant 0 : index
    %43 = vector.load %arg8[%c0_20, %c0_21] : memref<64x1xf32, #tpu.memory_space<vmem>>, vector<64x1xf32>
    tpu.vector_store %arg8[%c0_20, %c0_21], %23 {strides = array<i32>} : memref<64x1xf32, #tpu.memory_space<vmem>>, vector<64x1xf32>,
    %c0_22 = arith.constant 0 : index
    %44 = arith.index_cast %6 : i32 to index
    %c0_23 = arith.constant 0 : index
    %45 = vector.load %arg3[%c0_22, %44, %c0_23] : memref<1x64x32xf32, #tpu.memory_space<vmem>>, vector<1x64x32xf32>
    %46 = vector.shape_cast %45 : vector<1x64x32xf32> to vector<64x32xf32>
    %47 = vector.extract_strided_slice %46 {offsets = [0, 16], sizes = [64, 16], strides = [1, 1]} : vector<64x32xf32> to vector<64x16xf32>
    %c0_24 = arith.constant 0 : index
    %c0_25 = arith.constant 0 : index
    %48 = vector.load %arg11[%c0_24, %c0_25] : memref<16x16xf32, #tpu.memory_space<vmem>>, vector<16x16xf32>
    %cst_26 = arith.constant dense<0.000000e+00> : vector<16x16xf32>
    %49 = tpu.matmul %47, %47, %cst_26 {dimension_numbers = #tpu.dot_dimension_numbers<[0], [0], [1], [1], [0, 1, 1, 1], [], []>} : vector<64x16xf32>, vector<64x16xf32>, vector<16x16xf32> -> vector<16x16xf32>
    %50 = arith.addf %48, %49 : vector<16x16xf32>
    %c0_27 = arith.constant 0 : index
    %c0_28 = arith.constant 0 : index
    %51 = vector.load %arg11[%c0_27, %c0_28] : memref<16x16xf32, #tpu.memory_space<vmem>>, vector<16x16xf32>
    tpu.vector_store %arg11[%c0_27, %c0_28], %50 {strides = array<i32>} : memref<16x16xf32, #tpu.memory_space<vmem>>, vector<16x16xf32>,
    %c0_i32_29 = arith.constant 0 : i32
    %52 = arith.cmpi eq, %arg2, %c0_i32_29 : i32
    %53 = arith.extui %52 : i1 to i32
    %c0_i32_30 = arith.constant 0 : i32
    %54 = arith.cmpi ne, %53, %c0_i32_30 : i32
    scf.if %54 {
      %c0_31 = arith.constant 0 : index
      %55 = arith.index_cast %5 : i32 to index
      %c0_32 = arith.constant 0 : index
      %56 = vector.load %arg3[%c0_31, %55, %c0_32] : memref<1x64x32xf32, #tpu.memory_space<vmem>>, vector<1x64x32xf32>
      %57 = vector.shape_cast %56 : vector<1x64x32xf32> to vector<64x32xf32>
      %58 = vector.extract_strided_slice %57 {offsets = [0, 0], sizes = [64, 16], strides = [1, 1]} : vector<64x32xf32> to vector<64x16xf32>
      %59 = vector.extract_strided_slice %57 {offsets = [0, 16], sizes = [64, 16], strides = [1, 1]} : vector<64x32xf32> to vector<64x16xf32>
      %c0_33 = arith.constant 0 : index
      %60 = memref.load %arg5[%c0_33] : memref<1xf32, #tpu.memory_space<smem>>
      %c0_34 = arith.constant 0 : index
      %c0_35 = arith.constant 0 : index
      %61 = vector.load %arg10[%c0_34, %c0_35] : memref<64x16xf32, #tpu.memory_space<vmem>>, vector<64x16xf32>
      %c0_36 = arith.constant 0 : index
      %c0_37 = arith.constant 0 : index
      %62 = vector.load %arg9[%c0_36, %c0_37] : memref<64x1xf32, #tpu.memory_space<vmem>>, vector<64x1xf32>
      %63 = tpu.reciprocal %62 {approx = true} : vector<64x1xf32> -> vector<64x1xf32>
      %64 = vector.broadcast %63 : vector<64x1xf32> to vector<64x16xf32>
      %65 = arith.mulf %61, %64 : vector<64x16xf32>
      %66 = vector.broadcast %60 : f32 to vector<64x16xf32>
      %67 = arith.mulf %66, %65 : vector<64x16xf32>
      %68 = arith.addf %67, %58 : vector<64x16xf32>
      %c0_38 = arith.constant 0 : index
      %c0_39 = arith.constant 0 : index
      %69 = vector.load %arg11[%c0_38, %c0_39] : memref<16x16xf32, #tpu.memory_space<vmem>>, vector<16x16xf32>
      %cst_40 = arith.constant dense<0x7F800000> : vector<16xf32>
      %70 = vector.multi_reduction <minimumf>, %69, %cst_40 [1] : vector<16x16xf32> to vector<16xf32>
      %71 = vector.shape_cast %70 : vector<16xf32> to vector<16x1xf32>
      %72 = vector.broadcast %71 : vector<16x1xf32> to vector<16x16xf32>
      %73 = arith.subf %72, %69 : vector<16x16xf32>
      %74 = math.exp %73 : vector<16x16xf32>
      %cst_41 = arith.constant dense<0.000000e+00> : vector<16xf32>
      %75 = vector.multi_reduction <add>, %74, %cst_41 [1] : vector<16x16xf32> to vector<16xf32>
      %76 = vector.shape_cast %75 : vector<16xf32> to vector<16x1xf32>
      %77 = tpu.reciprocal %76 {approx = true} : vector<16x1xf32> -> vector<16x1xf32>
      %78 = vector.broadcast %77 : vector<16x1xf32> to vector<16x16xf32>
      %79 = arith.mulf %74, %78 : vector<16x16xf32>
      %cst_42 = arith.constant dense<0.000000e+00> : vector<64x16xf32>
      %80 = tpu.matmul %59, %79, %cst_42 {dimension_numbers = #tpu.dot_dimension_numbers<[1], [1], [0], [0], [0, 0, 1, 0], [], []>} : vector<64x16xf32>, vector<16x16xf32>, vector<64x16xf32> -> vector<64x16xf32>
      %c0_43 = arith.constant 0 : index
      %81 = memref.load %arg6[%c0_43] : memref<1xf32, #tpu.memory_space<smem>>
      %82 = vector.broadcast %81 : f32 to vector<64x16xf32>
      %83 = arith.mulf %82, %80 : vector<64x16xf32>
      %84 = arith.addf %83, %59 : vector<64x16xf32>
      %85 = tpu.concatenate %68, %84 in 1 : vector<64x16xf32>, vector<64x16xf32> -> vector<64x32xf32>
      %c0_44 = arith.constant 0 : index
      %c0_45 = arith.constant 0 : index
      %c0_46 = arith.constant 0 : index
      %86 = vector.load %arg7[%c0_44, %c0_45, %c0_46] : memref<1x64x32xf32, #tpu.memory_space<vmem>>, vector<1x64x32xf32>
      %87 = vector.shape_cast %86 : vector<1x64x32xf32> to vector<64x32xf32>
      %88 = vector.shape_cast %85 : vector<64x32xf32> to vector<1x64x32xf32>
      tpu.vector_store %arg7[%c0_44, %c0_45, %c0_46], %88 {strides = array<i32>} : memref<1x64x32xf32, #tpu.memory_space<vmem>>, vector<1x64x32xf32>,
    } else {
    }
    return
  }
  func.func @transform_0(%arg0: i32, %arg1: i32, %arg2: i32) -> (i32, i32, i32) {
    %c0_i32 = arith.constant 0 : i32
    %c0_i32_0 = arith.constant 0 : i32
    %c0_i32_1 = arith.constant 0 : i32
    return %arg0, %c0_i32, %c0_i32_0 : i32, i32, i32
  }
  func.func @transform_1(%arg0: i32, %arg1: i32, %arg2: i32) -> (i32, i32, i32) {
    %c0_i32 = arith.constant 0 : i32
    %c0_i32_0 = arith.constant 0 : i32
    %c0_i32_1 = arith.constant 0 : i32
    return %arg0, %c0_i32, %c0_i32_0 : i32, i32, i32
  }
  func.func @transform_2(%arg0: i32, %arg1: i32, %arg2: i32) -> i32 {
    %c0_i32 = arith.constant 0 : i32
    %c0_i32_0 = arith.constant 0 : i32
    return %c0_i32 : i32
  }
  func.func @transform_3(%arg0: i32, %arg1: i32, %arg2: i32) -> i32 {
    %c0_i32 = arith.constant 0 : i32
    %c0_i32_0 = arith.constant 0 : i32
    return %c0_i32 : i32
  }
  func.func @transform_4(%arg0: i32, %arg1: i32, %arg2: i32) -> (i32, i32, i32) {
    %c0_i32 = arith.constant 0 : i32
    %c0_i32_0 = arith.constant 0 : i32
    return %arg0, %arg1, %c0_i32 : i32, i32, i32
  }
}

module attributes {stable_mosaic.version = 11 : i64} {
  func.func @_tail_kernel(%arg0: i32, %arg1: i32, %arg2: memref<1x64x144xbf16, #tpu.memory_space<vmem>>, %arg3: memref<1x64x144xbf16, #tpu.memory_space<vmem>>, %arg4: memref<144x256xbf16, #tpu.memory_space<vmem>>, %arg5: memref<1x256xf32, #tpu.memory_space<vmem>>, %arg6: memref<1x256xf32, #tpu.memory_space<vmem>>, %arg7: memref<144x256xbf16, #tpu.memory_space<vmem>>, %arg8: memref<1x256xf32, #tpu.memory_space<vmem>>, %arg9: memref<1x256xf32, #tpu.memory_space<vmem>>, %arg10: memref<1x64x256xf32, #tpu.memory_space<vmem>>) attributes {dimension_semantics = [#tpu.dimension_semantics<parallel>, #tpu.dimension_semantics<parallel>], iteration_bounds = array<i64: 2, 1>, scalar_prefetch = 0 : i64, scratch_operands = 0 : i64, tpu.core_type = #tpu.core_type<tc>, window_params = [{transform_indices = @transform_0, window_bounds = array<i64: 1, 64, 144>}, {transform_indices = @transform_1, window_bounds = array<i64: 1, 64, 144>}, {pipeline_mode = #tpu.pipeline_mode<synchronous>, transform_indices = @transform_2, window_bounds = array<i64: 144, 256>}, {pipeline_mode = #tpu.pipeline_mode<synchronous>, transform_indices = @transform_3, window_bounds = array<i64: 1, 256>}, {pipeline_mode = #tpu.pipeline_mode<synchronous>, transform_indices = @transform_4, window_bounds = array<i64: 1, 256>}, {pipeline_mode = #tpu.pipeline_mode<synchronous>, transform_indices = @transform_5, window_bounds = array<i64: 144, 256>}, {pipeline_mode = #tpu.pipeline_mode<synchronous>, transform_indices = @transform_6, window_bounds = array<i64: 1, 256>}, {pipeline_mode = #tpu.pipeline_mode<synchronous>, transform_indices = @transform_7, window_bounds = array<i64: 1, 256>}, {transform_indices = @transform_8, window_bounds = array<i64: 1, 64, 256>}]} {
    %c0 = arith.constant 0 : index
    %c0_0 = arith.constant 0 : index
    %c0_1 = arith.constant 0 : index
    %0 = vector.load %arg2[%c0, %c0_0, %c0_1] : memref<1x64x144xbf16, #tpu.memory_space<vmem>>, vector<1x64x144xbf16>
    %1 = vector.shape_cast %0 : vector<1x64x144xbf16> to vector<64x144xbf16>
    %c0_2 = arith.constant 0 : index
    %c0_3 = arith.constant 0 : index
    %2 = vector.load %arg4[%c0_2, %c0_3] : memref<144x256xbf16, #tpu.memory_space<vmem>>, vector<144x256xbf16>
    %cst = arith.constant dense<0.000000e+00> : vector<64x256xf32>
    %3 = tpu.matmul %1, %2, %cst {dimension_numbers = #tpu.dot_dimension_numbers<[1], [0], [0], [1], [0, 0, 1, 1], [], []>} : vector<64x144xbf16>, vector<144x256xbf16>, vector<64x256xf32> -> vector<64x256xf32>
    %c0_4 = arith.constant 0 : index
    %c0_5 = arith.constant 0 : index
    %4 = vector.load %arg5[%c0_4, %c0_5] : memref<1x256xf32, #tpu.memory_space<vmem>>, vector<1x256xf32>
    %5 = vector.broadcast %4 : vector<1x256xf32> to vector<64x256xf32>
    %6 = arith.mulf %3, %5 : vector<64x256xf32>
    %c0_6 = arith.constant 0 : index
    %c0_7 = arith.constant 0 : index
    %7 = vector.load %arg6[%c0_6, %c0_7] : memref<1x256xf32, #tpu.memory_space<vmem>>, vector<1x256xf32>
    %8 = vector.broadcast %7 : vector<1x256xf32> to vector<64x256xf32>
    %9 = arith.addf %6, %8 : vector<64x256xf32>
    %cst_8 = arith.constant 0.000000e+00 : f32
    %10 = vector.broadcast %cst_8 : f32 to vector<64x256xf32>
    %11 = arith.maximumf %9, %10 : vector<64x256xf32>
    %c0_9 = arith.constant 0 : index
    %c0_10 = arith.constant 0 : index
    %c0_11 = arith.constant 0 : index
    %12 = vector.load %arg3[%c0_9, %c0_10, %c0_11] : memref<1x64x144xbf16, #tpu.memory_space<vmem>>, vector<1x64x144xbf16>
    %13 = vector.shape_cast %12 : vector<1x64x144xbf16> to vector<64x144xbf16>
    %c0_12 = arith.constant 0 : index
    %c0_13 = arith.constant 0 : index
    %14 = vector.load %arg7[%c0_12, %c0_13] : memref<144x256xbf16, #tpu.memory_space<vmem>>, vector<144x256xbf16>
    %cst_14 = arith.constant dense<0.000000e+00> : vector<64x256xf32>
    %15 = tpu.matmul %13, %14, %cst_14 {dimension_numbers = #tpu.dot_dimension_numbers<[1], [0], [0], [1], [0, 0, 1, 1], [], []>} : vector<64x144xbf16>, vector<144x256xbf16>, vector<64x256xf32> -> vector<64x256xf32>
    %c0_15 = arith.constant 0 : index
    %c0_16 = arith.constant 0 : index
    %16 = vector.load %arg8[%c0_15, %c0_16] : memref<1x256xf32, #tpu.memory_space<vmem>>, vector<1x256xf32>
    %17 = vector.broadcast %16 : vector<1x256xf32> to vector<64x256xf32>
    %18 = arith.mulf %15, %17 : vector<64x256xf32>
    %c0_17 = arith.constant 0 : index
    %c0_18 = arith.constant 0 : index
    %19 = vector.load %arg9[%c0_17, %c0_18] : memref<1x256xf32, #tpu.memory_space<vmem>>, vector<1x256xf32>
    %20 = vector.broadcast %19 : vector<1x256xf32> to vector<64x256xf32>
    %21 = arith.addf %18, %20 : vector<64x256xf32>
    %cst_19 = arith.constant 0.000000e+00 : f32
    %22 = vector.broadcast %cst_19 : f32 to vector<64x256xf32>
    %23 = arith.maximumf %21, %22 : vector<64x256xf32>
    %24 = arith.addf %11, %23 : vector<64x256xf32>
    %c0_20 = arith.constant 0 : index
    %c0_21 = arith.constant 0 : index
    %c0_22 = arith.constant 0 : index
    %25 = vector.load %arg10[%c0_20, %c0_21, %c0_22] : memref<1x64x256xf32, #tpu.memory_space<vmem>>, vector<1x64x256xf32>
    %26 = vector.shape_cast %25 : vector<1x64x256xf32> to vector<64x256xf32>
    %27 = vector.shape_cast %24 : vector<64x256xf32> to vector<1x64x256xf32>
    tpu.vector_store %arg10[%c0_20, %c0_21, %c0_22], %27 {strides = array<i32>} : memref<1x64x256xf32, #tpu.memory_space<vmem>>, vector<1x64x256xf32>,
    return
  }
  func.func @transform_0(%arg0: i32, %arg1: i32) -> (i32, i32, i32) {
    %c0_i32 = arith.constant 0 : i32
    %c0_i32_0 = arith.constant 0 : i32
    return %arg0, %arg1, %c0_i32 : i32, i32, i32
  }
  func.func @transform_1(%arg0: i32, %arg1: i32) -> (i32, i32, i32) {
    %c0_i32 = arith.constant 0 : i32
    %c0_i32_0 = arith.constant 0 : i32
    return %arg0, %arg1, %c0_i32 : i32, i32, i32
  }
  func.func @transform_2(%arg0: i32, %arg1: i32) -> (i32, i32) {
    %c0_i32 = arith.constant 0 : i32
    %c0_i32_0 = arith.constant 0 : i32
    %c0_i32_1 = arith.constant 0 : i32
    return %c0_i32, %c0_i32_0 : i32, i32
  }
  func.func @transform_3(%arg0: i32, %arg1: i32) -> (i32, i32) {
    %c0_i32 = arith.constant 0 : i32
    %c0_i32_0 = arith.constant 0 : i32
    %c0_i32_1 = arith.constant 0 : i32
    return %c0_i32, %c0_i32_0 : i32, i32
  }
  func.func @transform_4(%arg0: i32, %arg1: i32) -> (i32, i32) {
    %c0_i32 = arith.constant 0 : i32
    %c0_i32_0 = arith.constant 0 : i32
    %c0_i32_1 = arith.constant 0 : i32
    return %c0_i32, %c0_i32_0 : i32, i32
  }
  func.func @transform_5(%arg0: i32, %arg1: i32) -> (i32, i32) {
    %c0_i32 = arith.constant 0 : i32
    %c0_i32_0 = arith.constant 0 : i32
    %c0_i32_1 = arith.constant 0 : i32
    return %c0_i32, %c0_i32_0 : i32, i32
  }
  func.func @transform_6(%arg0: i32, %arg1: i32) -> (i32, i32) {
    %c0_i32 = arith.constant 0 : i32
    %c0_i32_0 = arith.constant 0 : i32
    %c0_i32_1 = arith.constant 0 : i32
    return %c0_i32, %c0_i32_0 : i32, i32
  }
  func.func @transform_7(%arg0: i32, %arg1: i32) -> (i32, i32) {
    %c0_i32 = arith.constant 0 : i32
    %c0_i32_0 = arith.constant 0 : i32
    %c0_i32_1 = arith.constant 0 : i32
    return %c0_i32, %c0_i32_0 : i32, i32
  }
  func.func @transform_8(%arg0: i32, %arg1: i32) -> (i32, i32, i32) {
    %c0_i32 = arith.constant 0 : i32
    %c0_i32_0 = arith.constant 0 : i32
    return %arg0, %arg1, %c0_i32 : i32, i32, i32
  }
}

</mosaic_0001>

<bundles_post_ra>
// kernel: dahead_forward.3
= control target key start
LH: loop header
LB: loop body
LE: loop exit
PB: predicated region body
PF: predicated region fallthrough
CT: control target
= control target key end

     0   :  { %s1614_s24 = smov 0   ;;  %s1616_s25 = smov 0   ;;  %s1844_s0 = inlined_call_operand.vmem [shape: bf16[2,64,576], index: 0, kind: input, shape index: {}]   ;;  %s1845_s1 = inlined_call_operand.vmem [shape: bf16[576,32], index: 1, kind: input, shape index: {}]   ;;  %s1846_s2 = inlined_call_operand.vmem [shape: f32[1,32], index: 2, kind: input, shape index: {}]   ;;  %s1847_s3 = inlined_call_operand.vmem [shape: f32[1,32], index: 3, kind: input, shape index: {}]   ;;  %s1848_s4 = inlined_call_operand.vmem [shape: bf16[16,20], index: 4, kind: input, shape index: {}]   ;;  %s1849_s5 = inlined_call_operand.vmem [shape: f32[1,20], index: 5, kind: input, shape index: {}]   ;;  %s1850_s6 = inlined_call_operand.vmem [shape: f32[2,64,32], index: 6, kind: output, shape index: {0}]   ;;  %s1851_s7 = inlined_call_operand.vmem [shape: f32[2,64,20], index: 7, kind: output, shape index: {1}]  }
   0x1   :  { %s1618_s26 = smov 0  }
   0x2 LB: > { %s30_s27 = sadd.s32 1, %s1568_s25  ;;  %p1263_p0 = scmp.ge.s32.totalorder %s1572_s26, 1  ;;  %s1572_s26 = sphi %s1618_s26, %s18_s26   ;;  %s1568_s25 = sphi %s1616_s25, %s1853_s25   ;;  %s1564_s24 = sphi %s1614_s24, %s1852_s24  }
   0x3   : > { %p32_p1 = scmp.ge.s32.totalorder %s30_s27, 2  ;;  %p264_p2 = scmp.lt.s32.totalorder %s1572_s26, 3 }
   0x5   : > { %s1855_s27 = smov (%p32_p1, %s30_s27), 0  ;;  %p265_p3 = pnand %p1263_p0, %p264_p2 }
   0x6   : > { %p315_p4 = scmp.lt.s32.totalorder (!%p265_p3), %s1564_s24, 1 }
   0x7   : > { %268 = sbr.rel (%p265_p3) target bundleno = 498 (0x1f2), region = 44 }
   0xc   : > { %v1485_v0 = vld [vmem:[%s1845_s1 + $0x78] sm:$0xff]   ;;  %v1489_v4 = vld [vmem:[%s1845_s1 + $0x70] sm:$0xff]   ;;  %v1493_v8 = vld [vmem:[%s1845_s1 + $0x68] sm:$0xff]   ;;  %s1857_s24 = smov (!%p315_p4, %s1564_s24), 1  ;;  %vm758_vm0 = vcmask 523264   ;;  %vm1004_vm1 = vcmask 261120  }
   0xd   : > { %v1486_v1 = vld [vmem:[%s1845_s1 + $0xf8] sm:$0xff]   ;;  %1341 = vmatprep.subr.bf16.mxu0 %v1485_v0  ;;  %v1490_v5 = vld [vmem:[%s1845_s1 + $0xf0] sm:$0xff]   ;;  %v1494_v9 = vld [vmem:[%s1845_s1 + $0xe8] sm:$0xff]   ;;  %s1460_s19 = smul.u32 160, %s1857_s24  ;;  %vm1032_vm2 = vcmask 130048   ;;  %vm1110_vm3 = vcmask 162816  }
   0xe   : > { %v1487_v2 = vld [vmem:[%s1845_s1 + $0x38] sm:$0xff]   ;;  %1381 = vmatprep.subr.bf16.mxu1 %v1486_v1  ;;  %v1491_v6 = vld [vmem:[%s1845_s1 + $0x30] sm:$0xff]   ;;  %v1495_v10 = vld [vmem:[%s1845_s1 + $0x28] sm:$0xff]  }
   0xf   : > { %v1488_v3 = vld [vmem:[%s1845_s1 + $0xb8] sm:$0xff]   ;;  %1342 = vmatpush3.bf16.msra.mxu0 %v1487_v2  ;;  %v1492_v7 = vld [vmem:[%s1845_s1 + $0xb0] sm:$0xff]   ;;  %v1496_v11 = vld [vmem:[%s1845_s1 + $0xa8] sm:$0xff]   ;;  %s1732_s11 = scalar_lea.vmem %s1844_s0, %s1460_s19 }
  0x10   : > { %1382 = vmatpush3.bf16.msra.mxu1 %v1488_v3  ;;  %1343 = vmatprep.subr.bf16.mxu0 %v1489_v4  ;;  %v1497_v12 = vld [vmem:[%s1845_s1 + $0x60] sm:$0xff]   ;;  %v1501_v16 = vld [vmem:[%s1845_s1 + $0x58] sm:$0xff]   ;;  %v1505_v20 = vld [vmem:[%s1845_s1 + $0x50] sm:$0xff]  }
  0x11   : > { %1383 = vmatprep.subr.bf16.mxu1 %v1490_v5  ;;  %v1498_v13 = vld [vmem:[%s1845_s1 + $0xe0] sm:$0xff]   ;;  %v1502_v17 = vld [vmem:[%s1845_s1 + $0xd8] sm:$0xff]   ;;  %v1506_v21 = vld [vmem:[%s1845_s1 + $0xd0] sm:$0xff]  }
  0x12   : > { %v1499_v14 = vld [vmem:[%s1845_s1 + $0x20] sm:$0xff]   ;;  %v1503_v18 = vld [vmem:[%s1845_s1 + $0x18] sm:$0xff]   ;;  %v1507_v22 = vld [vmem:[%s1845_s1 + $0x10] sm:$0xff]  }
  0x13   : > { %1344 = vmatpush3.bf16.msra.mxu0 %v1491_v6  ;;  %v1500_v15 = vld [vmem:[%s1845_s1 + $0xa0] sm:$0xff]   ;;  %v1504_v19 = vld [vmem:[%s1845_s1 + $0x98] sm:$0xff]   ;;  %v1508_v23 = vld [vmem:[%s1845_s1 + $0x90] sm:$0xff]  }
  0x14   : > { %1384 = vmatpush3.bf16.msra.mxu1 %v1492_v7  ;;  %1345 = vmatprep.subr.bf16.mxu0 %v1493_v8  ;;  %v1509_v24 = vld [vmem:[%s1845_s1 + $0x48] sm:$0xff]   ;;  %v1513_v28 = vld [vmem:[%s1845_s1 + $0x40] sm:$0xff]   ;;  %v1523_v36 = vld [vmem:[%s1845_s1 + $0x118] sm:$0xff]  }
  0x15   : > { %1385 = vmatprep.subr.bf16.mxu1 %v1494_v9  ;;  %v1510_v25 = vld [vmem:[%s1845_s1 + $0xc8] sm:$0xff]   ;;  %v1514_v29 = vld [vmem:[%s1845_s1 + $0xc0] sm:$0xff]   ;;  %v1530_v39 = vld [vmem:[%s1845_s1 + $0x110] sm:$0xff]  }
  0x16   : > { %v1511_v26 = vld [vmem:[%s1845_s1 + $0x8] sm:$0xff]   ;;  %v1515_v30 = vld [vmem:[%s1845_s1] sm:$0xff]   ;;  %v1533_v43 = vld [vmem:[%s1732_s11 + $0x5c] ss:$20 sps:$4 sm:$0xff]  }
  0x17   : > { %1346 = vmatpush3.bf16.msra.mxu0 %v1495_v10  ;;  %v1512_v27 = vld [vmem:[%s1845_s1 + $0x88] sm:$0xff]   ;;  %v1516_v31 = vld [vmem:[%s1845_s1 + $0x80] sm:$0xff]   ;;  %v1538_v48 = vld [vmem:[%s1732_s11 + $0x7c] ss:$20 sps:$4 sm:$0xff]  }
  0x18   : > { %1386 = vmatpush3.bf16.msra.mxu1 %v1496_v11  ;;  %1347 = vmatprep.subr.bf16.mxu0 %v1497_v12  ;;  %v1517_v32 = vld [vmem:[%s1732_s11] ss:$20 sps:$4 sm:$0xff]   ;;  %v1519_v33 = vld [vmem:[%s1732_s11 + $0x4] ss:$20 sps:$4 sm:$0xff]   ;;  %v1520_v34 = vld [vmem:[%s1732_s11 + $0x8] ss:$20 sps:$4 sm:$0xff]  }
  0x19   : > { %1387 = vmatprep.subr.bf16.mxu1 %v1498_v13  ;;  %v1522_v35 = vld [vmem:[%s1732_s11 + $0xc] ss:$20 sps:$4 sm:$0xff]   ;;  %803 = vmatprep.mubr.bf16.mxu0 %v1519_v33  ;;  %v1526_v38 = vld [vmem:[%s1732_s11 + $0x34] ss:$20 sps:$4 sm:$0xff]   ;;  %v1529_v41 = vld [vmem:[%s1732_s11 + $0x30] ss:$20 sps:$4 sm:$0xff]  }
  0x1a   : > { %868 = vmatprep.mubr.bf16.mxu1 %v1522_v35  ;;  %v1524_v37 = vld [vmem:[%s1732_s11 + $0x2c] ss:$20 sps:$4 sm:$0xff]   ;;  %v1528_v40 = vld [vmem:[%s1732_s11 + $0x28] ss:$20 sps:$4 sm:$0xff]   ;;  %v1535_v46 = vld [vmem:[%s1732_s11 + $0x50] ss:$20 sps:$4 sm:$0xff]  }
  0x1b   : > { %1348 = vmatpush3.bf16.msra.mxu0 %v1499_v14  ;;  %v1531_v42 = vld [vmem:[%s1732_s11 + $0x54] ss:$20 sps:$4 sm:$0xff]   ;;  %v1544_v45 = vld [vmem:[%s1845_s1 + $0x100] sm:$0xff]   ;;  %v1536_v47 = vld [vmem:[%s1732_s11 + $0x58] ss:$20 sps:$4 sm:$0xff]  }
  0x1c   : > { %1388 = vmatpush3.bf16.msra.mxu1 %v1500_v15  ;;  %1349 = vmatprep.subr.bf16.mxu0 %v1501_v16  ;;  %v1537_v44 = vld [vmem:[%s1845_s1 + $0x108] sm:$0xff]   ;;  %v1540_v49 = vld [vmem:[%s1732_s11 + $0x84] ss:$20 sps:$4 sm:$0xff]   ;;  %v1543_v51 = vld [vmem:[%s1732_s11 + $0x80] ss:$20 sps:$4 sm:$0xff]  }
  0x1d   : > { %1389 = vmatprep.subr.bf16.mxu1 %v1502_v17  ;;  %v1542_v50 = vld [vmem:[%s1732_s11 + $0x78] ss:$20 sps:$4 sm:$0xff]   ;;  %v1545_v52 = vld [vmem:[%s1732_s11 + $0x10] ss:$20 sps:$4 sm:$0xff]   ;;  %v1547_v54 = vld [vmem:[%s1732_s11 + $0x60] ss:$20 sps:$4 sm:$0xff]  }
  0x1e   : > { %v1546_v53 = vld [vmem:[%s1732_s11 + $0x38] ss:$20 sps:$4 sm:$0xff]   ;;  %v1548_v55 = vld [vmem:[%s1732_s11 + $0x88] ss:$20 sps:$4 sm:$0xff]   ;;  %v1549_v56 = vld [vmem:[%s1848_s4] sm:$0xff]   ;;  %s1339_s11 = sshll.u32 %s1857_s24, 6 }
  0x1f   : > { %1350 = vmatpush3.bf16.msra.mxu0 %v1503_v18  ;;  %s1791_s14 = scalar_lea.vmem %s1850_s6, %s1339_s11  ;;  %s343_s19 = scalar_lea.vmem %s1851_s7, %s1339_s11 }
  0x20   : > { %1390 = vmatpush3.bf16.msra.mxu1 %v1504_v19  ;;  %1351 = vmatprep.subr.bf16.mxu0 %v1505_v20 }
  0x21   : > { %1391 = vmatprep.subr.bf16.mxu1 %v1506_v21 }
  0x23   : > { %1352 = vmatpush3.bf16.msra.mxu0 %v1507_v22 }
  0x24   : > { %1392 = vmatpush3.bf16.msra.mxu1 %v1508_v23  ;;  %1353 = vmatprep.subr.bf16.mxu0 %v1509_v24 }
  0x25   : > { %1393 = vmatprep.subr.bf16.mxu1 %v1510_v25 }
  0x27   : > { %1354 = vmatpush3.bf16.msra.mxu0 %v1511_v26 }
  0x28   : > { %1394 = vmatpush3.bf16.msra.mxu1 %v1512_v27  ;;  %1355 = vmatprep.subr.bf16.mxu0 %v1513_v28 }
  0x29   : > { %1395 = vmatprep.subr.bf16.mxu1 %v1514_v29 }
  0x2b   : > { %1356 = vmatpush3.bf16.msra.mxu0 %v1515_v30 }
  0x2c   : > { %1396 = vmatpush3.bf16.msra.mxu1 %v1516_v31  ;;  %1434 = vmatprep.subr.bf16.mxu0 %v1523_v36  ;;  %v1778_v31 = vld [vmem:[%s1846_s2] ss:$0 sm:$0xff] }
  0x2d   : > { %1450 = vmatprep.subr.bf16.mxu1 %v1549_v56 }
  0x2e   : > { %804 = vmatmul.mubr.bf16.vlgmr.msra.gmra.mxu0 %v1517_v32 }
  0x2f   : > { %869 = vmatmul.mubr.bf16.vlgmr.msra.gmra.mxu1 %v1520_v34  ;;  %1435 = vmatpush3.bf16.msra.mxu0 %v1523_v36 }
  0x30   : > { %811 = vmatprep.mubr.bf16.mxu0 %v1524_v37  ;;  %876 = vmatprep.mubr.bf16.mxu1 %v1526_v38 }
  0x31   : > { %1436 = vmatprep.subr.bf16.mxu0 %v1530_v39  ;;  %1451 = vmatpush3.bf16.msra.mxu1 %v1549_v56 }
  0x33   : > { %1437 = vmatpush3.bf16.msra.mxu0 %v1530_v39 }
  0x34   : > { %1438 = vmatprep.subr.bf16.mxu0 %v1537_v44 }
  0x36   : > { %812 = vmatmul.mubr.bf16.gmra.mxu0 %v1528_v40 }
  0x37   : > { %877 = vmatmul.mubr.bf16.gmra.mxu1 %v1529_v41  ;;  %819 = vmatprep.mubr.bf16.mxu0 %v1531_v42  ;;  %v1330_v41 = vld [vmem:[%s1847_s3] ss:$0 sm:$0xff] }
  0x38   : > { %884 = vmatprep.mubr.bf16.mxu1 %v1533_v43  ;;  %1439 = vmatpush3.bf16.msra.mxu0 %v1537_v44 }
  0x39   : > { %1440 = vmatprep.subr.bf16.mxu0 %v1544_v45 }
  0x3c   : > { %1441 = vmatpush3.bf16.msra.mxu0 %v1544_v45 }
  0x3e   : > { %820 = vmatmul.mubr.bf16.gmra.mxu0 %v1535_v46 }
  0x3f   : > { %885 = vmatmul.mubr.bf16.gmra.mxu1 %v1536_v47  ;;  %827 = vmatprep.mubr.bf16.mxu0 %v1538_v48 }
  0x40   : > { %892 = vmatprep.mubr.bf16.mxu1 %v1540_v49 }
  0x46   : > { %828 = vmatmul.mubr.bf16.gmra.mxu0 %v1542_v50 }
  0x47   : > { %893 = vmatmul.mubr.bf16.gmra.mxu1 %v1543_v51  ;;  %1442 = vmatprep.mubr.msk.bf16.mxu0 %vm758_vm0, %v1545_v52 }
  0x4e   : > { %1443 = vmatmul.mubr.msk.bf16.vlgmr.msra.gmra.mxu0 %vm758_vm0, %v1546_v53 }
  0x4f   : > { %1446 = vmatprep.mubr.msk.bf16.mxu0 %vm758_vm0, %v1547_v54 }
  0x56   : > { %1447 = vmatmul.mubr.msk.bf16.gmra.mxu0 %vm758_vm0, %v1548_v55 }
  0xee   : > { %v1357_v57 = vpop.f32.mrf.mxu0 }
  0xef   : > { %v1397_v58 = vpop.f32.mrf.mxu1 }
  0xf0   : > { %v1358_v59 = vpop.f32.mrf.mxu0 }
  0xf1   : > { %v1398_v60 = vpop.f32.mrf.mxu1  ;;  %v1359_v23 = vadd.f32 %v1358_v59, %v1357_v57 }
  0xf2   : > { %v1360_v61 = vpop.f32.mrf.mxu0  ;;  %v1399_v24 = vadd.f32 %v1398_v60, %v1397_v58 }
  0xf3   : > { %v1400_v62 = vpop.f32.mrf.mxu1 }
  0xf4   : > { %v1361_v63 = vpop.f32.mrf.mxu0  ;;  %v871_v36 = vadd.f32 %v1399_v24, %v1359_v23 }
  0xf5   : > { %v1401_v0 = vpop.f32.mrf.mxu1  ;;  %v1362_v32 = vadd.f32 %v1361_v63, %v1360_v61 }
  0xf6   : > { %v1363_v1 = vpop.f32.mrf.mxu0  ;;  %v1402_v33 = vadd.f32 %v1401_v0, %v1400_v62 }
  0xf7   : > { %v1403_v2 = vpop.f32.mrf.mxu1 }
  0xf8   : > { %v1364_v3 = vpop.f32.mrf.mxu0  ;;  %v874_v51 = vadd.f32 %v1402_v33, %v1362_v32 }
  0xf9   : > { %v1404_v4 = vpop.f32.mrf.mxu1  ;;  %v1365_v20 = vadd.f32 %v1364_v3, %v1363_v1 }
  0xfa   : > { %v1366_v5 = vpop.f32.mrf.mxu0  ;;  %v1405_v21 = vadd.f32 %v1404_v4, %v1403_v2 }
  0xfb   : > { %v1406_v6 = vpop.f32.mrf.mxu1 }
  0xfc   : > { %v1367_v7 = vpop.f32.mrf.mxu0  ;;  %v879_v29 = vadd.f32 %v1405_v21, %v1365_v20 }
  0xfd   : > { %v1407_v8 = vpop.f32.mrf.mxu1  ;;  %v1368_v27 = vadd.f32 %v1367_v7, %v1366_v5 }
  0xfe   : > { %v1369_v9 = vpop.f32.mrf.mxu0  ;;  %v1408_v28 = vadd.f32 %v1407_v8, %v1406_v6 }
  0xff   : > { %v1409_v10 = vpop.f32.mrf.mxu1 }
 0x100   : > { %v1370_v11 = vpop.f32.mrf.mxu0  ;;  %v882_v45 = vadd.f32 %v1408_v28, %v1368_v27 }
 0x101   : > { %v1410_v12 = vpop.f32.mrf.mxu1  ;;  %v1371_v37 = vadd.f32 %v1370_v11, %v1369_v9 }
 0x102   : > { %v1372_v13 = vpop.f32.mrf.mxu0  ;;  %v1411_v38 = vadd.f32 %v1410_v12, %v1409_v10 }
 0x103   : > { %v1412_v14 = vpop.f32.mrf.mxu1 }
 0x104   : > { %v1373_v15 = vpop.f32.mrf.mxu0  ;;  %v887_v54 = vadd.f32 %v1411_v38, %v1371_v37 }
 0x105   : > { %v1413_v16 = vpop.f32.mrf.mxu1  ;;  %v1374_v59 = vadd.f32 %v1373_v15, %v1372_v13 }
 0x106   : > { %v1375_v17 = vpop.f32.mrf.mxu0  ;;  %v1414_v60 = vadd.f32 %v1413_v16, %v1412_v14 }
 0x107   : > { %v1415_v18 = vpop.f32.mrf.mxu1 }
 0x108   : > { %v1376_v19 = vpop.f32.mrf.mxu0  ;;  %v890_v14 = vadd.f32 %v1414_v60, %v1374_v59 }
 0x109   : > { %v1416_v25 = vpop.f32.mrf.mxu1  ;;  %v1377_v39 = vadd.f32 %v1376_v19, %v1375_v17 }
 0x10a   : > { %v1378_v22 = vpop.f32.mrf.mxu0  ;;  %v1417_v40 = vadd.f32 %v1416_v25, %v1415_v18 }
 0x10b   : > { %v1418_v34 = vpop.f32.mrf.mxu1 }
 0x10c   : > { %v1379_v26 = vpop.f32.mrf.mxu0  ;;  %v895_v53 = vadd.f32 %v1417_v40, %v1377_v39 }
 0x10d   : > { %v1419_v47 = vpop.f32.mrf.mxu1  ;;  %v1380_v61 = vadd.f32 %v1379_v26, %v1378_v22 }
 0x10e   : > { %v1444_v30 = vpop.f32.mrf.mxu0  ;;  %v1420_v62 = vadd.f32 %v1419_v47, %v1418_v34 }
 0x10f   : > { %v944_v35 = vadd.f32 %v1444_v30, %v879_v29 }
 0x110   : > { %v935_v42 = vpop.f32.mrf.mxu0  ;;  %v898_v9 = vadd.f32 %v1420_v62, %v1380_v61 }
 0x111   : > { %v975_v43 = vmul.f32 %v1778_v31, %v944_v35  ;;  %v936_v44 = vadd.f32 %v935_v42, %v871_v36 }
 0x112   : > { %v1445_v46 = vpop.f32.mrf.mxu0 }
 0x113   : > { %v990_v48 = vadd.f32 %v1330_v41, %v975_v43  ;;  %v973_v49 = vmul.f32 %v1778_v31, %v936_v44  ;;  %v947_v50 = vadd.f32 %v1445_v46, %v882_v45 }
 0x114   : > { %v938_v52 = vpop.f32.mrf.mxu0 }
 0x115   : > { %v998_v55 = vmax.f32 %v990_v48, 0.0  ;;  %v988_v56 = vadd.f32 %v1330_v41, %v973_v49  ;;  %v976_v57 = vmul.f32 %v1778_v31, %v947_v50  ;;  %v939_v58 = vadd.f32 %v938_v52, %v874_v51 }
 0x116   : > { %v1448_v63 = vpop.f32.mrf.mxu0 }
 0x117   : > { %1007 = vst.msk [vmem:[%s1791_s14 + $0x10] sm:$0xff] %vm1004_vm1, %v998_v55  ;;  %v996_v0 = vmax.f32 %v988_v56, 0.0  ;;  %v991_v1 = vadd.f32 %v1330_v41, %v976_v57  ;;  %v974_v2 = vmul.f32 %v1778_v31, %v939_v58  ;;  %v960_v3 = vadd.f32 %v1448_v63, %v895_v53 }
 0x118   : > { %v951_v4 = vpop.f32.mrf.mxu0 }
 0x119   : > { %1005 = vst.msk [vmem:[%s1791_s14] sm:$0xff] %vm1004_vm1, %v996_v0  ;;  %v999_v5 = vmax.f32 %v991_v1, 0.0  ;;  %v989_v6 = vadd.f32 %v1330_v41, %v974_v2  ;;  %v979_v7 = vmul.f32 %v1778_v31, %v960_v3  ;;  %v952_v8 = vadd.f32 %v951_v4, %v887_v54 }
 0x11a   : > { %v1449_v10 = vpop.f32.mrf.mxu0 }
 0x11b   : > { %1008 = vst.msk [vmem:[%s1791_s14 + $0x18] sm:$0xff] %vm1004_vm1, %v999_v5  ;;  %v997_v11 = vmax.f32 %v989_v6, 0.0  ;;  %v994_v12 = vadd.f32 %v1330_v41, %v979_v7  ;;  %v977_v13 = vmul.f32 %v1778_v31, %v952_v8  ;;  %v963_v15 = vadd.f32 %v1449_v10, %v898_v9 }
 0x11c   : > { %v954_v16 = vpop.f32.mrf.mxu0  ;;  %v1014_v21 = vpack.c.bf16 %v999_v5, %v998_v55 }
 0x11d   : > { %1006 = vst.msk [vmem:[%s1791_s14 + $0x8] sm:$0xff] %vm1004_vm1, %v997_v11  ;;  %v1013_v17 = vpack.c.bf16 %v997_v11, %v996_v0  ;;  %v1002_v18 = vmax.f32 %v994_v12, 0.0  ;;  %v992_v19 = vadd.f32 %v1330_v41, %v977_v13  ;;  %v955_v20 = vadd.f32 %v954_v16, %v890_v14 }
 0x11e   : > { %v980_v22 = vmul.f32 %v1778_v31, %v963_v15 }
 0x11f   : > { %1011 = vst.msk [vmem:[%s1791_s14 + $0x30] sm:$0xff] %vm1004_vm1, %v1002_v18  ;;  %v1000_v23 = vmax.f32 %v992_v19, 0.0  ;;  %v978_v24 = vmul.f32 %v1778_v31, %v955_v20  ;;  %1452 = vmatprep.mubr.msk.bf16.mxu1 %vm1032_vm2, %v1013_v17  ;;  %v1331_v31 = vld [vmem:[%s1849_s5] ss:$0 sm:$0xff] }
 0x120   : > { %v995_v25 = vadd.f32 %v1330_v41, %v980_v22  ;;  %1453 = vmatmul.mubr.msk.bf16.vlgmr.msra.gmra.mxu1 %vm1032_vm2, %v1014_v21 }
 0x121   : > { %1009 = vst.msk [vmem:[%s1791_s14 + $0x20] sm:$0xff] %vm1004_vm1, %v1000_v23  ;;  %v993_v26 = vadd.f32 %v1330_v41, %v978_v24 }
 0x122   : > { %v1003_v27 = vmax.f32 %v995_v25, 0.0 }
 0x123   : > { %v1001_v28 = vmax.f32 %v993_v26, 0.0 }
 0x124   : > { %1012 = vst.msk [vmem:[%s1791_s14 + $0x38] sm:$0xff] %vm1004_vm1, %v1003_v27  ;;  %v1016_v30 = vpack.c.bf16 %v1003_v27, %v1002_v18 }
 0x125   : > { %1010 = vst.msk [vmem:[%s1791_s14 + $0x28] sm:$0xff] %vm1004_vm1, %v1001_v28  ;;  %v1015_v29 = vpack.c.bf16 %v1001_v28, %v1000_v23 }
 0x127   : > { %1456 = vmatprep.mubr.msk.bf16.mxu1 %vm1032_vm2, %v1015_v29 }
 0x128   : > { %1457 = vmatmul.mubr.msk.bf16.gmra.mxu1 %vm1032_vm2, %v1016_v30 }
 0x1e0   : > { %v1454_v32 = vpop.f32.mrf.mxu1 }
 0x1e1   : > { %v1088_v33 = vadd.f32 %v1454_v32, %v1331_v31 }
 0x1e2   : > { %v1079_v34 = vpop.f32.mrf.mxu1 }
 0x1e3   : > { %1113 = vst.msk [vmem:[%s343_s19 + $0x10] sm:$0xff] %vm1110_vm3, %v1088_v33  ;;  %v1080_v35 = vadd.f32 %v1331_v31, %v1079_v34 }
 0x1e4   : > { %v1455_v36 = vpop.f32.mrf.mxu1 }
 0x1e5   : > { %1111 = vst.msk [vmem:[%s343_s19] sm:$0xff] %vm1110_vm3, %v1080_v35  ;;  %v1091_v37 = vadd.f32 %v1455_v36, %v1331_v31 }
 0x1e6   : > { %v1082_v38 = vpop.f32.mrf.mxu1 }
 0x1e7   : > { %1114 = vst.msk [vmem:[%s343_s19 + $0x18] sm:$0xff] %vm1110_vm3, %v1091_v37  ;;  %v1083_v39 = vadd.f32 %v1331_v31, %v1082_v38 }
 0x1e8   : > { %v1458_v40 = vpop.f32.mrf.mxu1 }
 0x1e9   : > { %1112 = vst.msk [vmem:[%s343_s19 + $0x8] sm:$0xff] %vm1110_vm3, %v1083_v39  ;;  %v1104_v41 = vadd.f32 %v1458_v40, %v1331_v31 }
 0x1ea   : > { %v1095_v42 = vpop.f32.mrf.mxu1 }
 0x1eb   : > { %1117 = vst.msk [vmem:[%s343_s19 + $0x30] sm:$0xff] %vm1110_vm3, %v1104_v41  ;;  %v1096_v43 = vadd.f32 %v1331_v31, %v1095_v42 }
 0x1ec   : > { %v1459_v44 = vpop.f32.mrf.mxu1 }
 0x1ed   : > { %1115 = vst.msk [vmem:[%s343_s19 + $0x20] sm:$0xff] %vm1110_vm3, %v1096_v43  ;;  %v1107_v45 = vadd.f32 %v1459_v44, %v1331_v31 }
 0x1ee   : > { %v1098_v46 = vpop.f32.mrf.mxu1 }
 0x1ef   : > { %1118 = vst.msk [vmem:[%s343_s19 + $0x38] sm:$0xff] %vm1110_vm3, %v1107_v45  ;;  %v1099_v47 = vadd.f32 %v1331_v31, %v1098_v46 }
 0x1f1   : > { %1116 = vst.msk [vmem:[%s343_s19 + $0x28] sm:$0xff] %vm1110_vm3, %v1099_v47 }
 0x1f2 PF: > { %s18_s26 = sadd.s32 1, %s1572_s26   ;;  %s1852_s24 = smov %s1568_s25 }
 0x1f3   : > { %p15_p5 = scmp.ge.s32.totalorder %s18_s26, 4   ;;  %s1853_s25 = smov %s1855_s27 }
 0x1f5   :  { %17 = sbr.rel (!%p15_p5) target bundleno = 2 (0x2), region = 86 }

// kernel: dahead_forward.4
= control target key start
LH: loop header
LB: loop body
LE: loop exit
PB: predicated region body
PF: predicated region fallthrough
CT: control target
= control target key end

     0   :  { %s1691_s19 = smov 0   ;;  %s1693_s20 = smov 0   ;;  %s2135_s0 = inlined_call_operand.vmem [shape: f32[2,64,32], index: 0, kind: input, shape index: {}]   ;;  %s2136_s1 = inlined_call_operand.vmem [shape: f32[2,64,20], index: 1, kind: input, shape index: {}]   ;;  %s2137_s2 = inlined_call_operand.<no memory space> [shape: f32[1], index: 2, kind: input, shape index: {}]   ;;  %s2138_s3 = inlined_call_operand.<no memory space> [shape: f32[1], index: 3, kind: input, shape index: {}]   ;;  %s2139_s4 = inlined_call_operand.vmem [shape: f32[2,64,32], index: 4, kind: output, shape index: {}]  }
   0x1   :  { %9 = sst [smem:[#allocation6]] %s2137_s2  ;;  %s1695_s21 = smov 0  }
   0x2   :  { %10 = sst [smem:[#allocation7]] %s2138_s3 }
   0x3 LB: > { %s35_s2 = sadd.s32 1, %s1647_s20  ;;  %p1393_p0 = scmp.ge.s32.totalorder %s1651_s21, 1  ;;  %s1651_s21 = sphi %s1695_s21, %s16_s21   ;;  %s1647_s20 = sphi %s1693_s20, %s2141_s20   ;;  %s1643_s19 = sphi %s1691_s19, %s2140_s19  }
   0x4   : > { %p37_p1 = scmp.ge.s32.totalorder %s35_s2, 2  ;;  %p195_p2 = scmp.lt.s32.totalorder %s1651_s21, 3 }
   0x6   : > { %s2143_s2 = smov (%p37_p1, %s35_s2), 0  ;;  %p196_p3 = pnand %p1393_p0, %p195_p2 }
   0x7   : > { %p230_p4 = scmp.lt.s32.totalorder (!%p196_p3), %s1643_s19, 1  ;;  %s1653_s28 = smov (!%p196_p3), 112  }
   0x8   : > { %199 = sbr.rel (%p196_p3) target bundleno = 1151 (0x47f), region = 36  ;;  %s1654_s29 = smov (!%p196_p3), 126  }
   0x9   : > { %s1658_s30 = smov (!%p196_p3), 124   ;;  %s1210_s5 = sld [smem:[#allocation7]] (!%p196_p3) }
   0xa   : > { %s1659_s6 = smov (!%p196_p3), 16   ;;  %s945_s7 = sld [smem:[#allocation6]] (!%p196_p3) }
   0xd   : > { %s2145_s19 = smov (!%p230_p4, %s1643_s19), 1  ;;  %vm323_vm0 = vcmask 15360   ;;  %vm272_vm1 = vcmask 130048   ;;  %v1655_v36 = vmov 0.0   ;;  %vm421_vm2 = vcmask 523264  }
   0xe   : > { %s1709_s3 = sshll.u32 %s2145_s19, 6  ;;  %282 = vst.msk [vmem:[#allocation5 + $0x8] sm:$0xff] %vm272_vm1, %v1655_v36  ;;  %273 = vst.msk [vmem:[#allocation4] sm:$0xff] %vm272_vm1, %v1655_v36  ;;  %vm255_vm3 = vcmask 7168   ;;  %v1656_v39 = vmov -inf   ;;  %v1657_v51 = vmov 0  }
   0xf   : > { %s1715_s24 = scalar_lea.vmem %s2135_s0, %s1709_s3  ;;  %s239_s27 = scalar_lea.vmem %s2136_s1, %s1709_s3  ;;  %274 = vst.msk [vmem:[#allocation4 + $0x8] sm:$0xff] %vm272_vm1, %v1655_v36  ;;  %275 = vst.msk [vmem:[#allocation4 + $0x10] sm:$0xff] %vm272_vm1, %v1655_v36  ;;  %1563 = vset.pattern.permute.xlu1 %v1657_v51  ;;  %vm1276_vm4 = vcmask 261120  }
  0x10   : > { %v1722_v0 = vld [vmem:[%s1715_s24] sm:$0xff]  ;;  %v1725_v1 = vld [vmem:[%s1715_s24 + $0x8] sm:$0xff]  ;;  %v301_v2 = vld [vmem:[%s239_s27 + $0x30] sm:$0xff]  ;;  %276 = vst.msk [vmem:[#allocation4 + $0x18] sm:$0xff] %vm272_vm1, %v1655_v36  ;;  %s2093_s10 = scalar_lea.vmem %s2139_s4, %s1709_s3 }
  0x11   : > { %792 = vrot.lane.b32.xlu0 %v1722_v0, %s1653_s28  ;;  %794 = vrot.lane.b32.xlu1 %v1725_v1, %s1653_s28  ;;  %v302_v3 = vld [vmem:[%s239_s27 + $0x38] sm:$0xff]  ;;  %v1734_v5 = vld [vmem:[%s1715_s24 + $0x10] sm:$0xff]  ;;  %277 = vst.msk [vmem:[#allocation4 + $0x20] sm:$0xff] %vm272_vm1, %v1655_v36  ;;  %278 = vst.msk [vmem:[#allocation4 + $0x28] sm:$0xff] %vm272_vm1, %v1655_v36 }
  0x12   : > { %v1731_v4 = vpack.c.bf16 %v302_v3, %v301_v2  ;;  %v1737_v6 = vld [vmem:[%s1715_s24 + $0x18] sm:$0xff]  ;;  %v295_v7 = vld [vmem:[%s239_s27] sm:$0xff]  ;;  %v296_v8 = vld [vmem:[%s239_s27 + $0x8] sm:$0xff]  ;;  %279 = vst.msk [vmem:[#allocation4 + $0x30] sm:$0xff] %vm272_vm1, %v1655_v36 }
  0x13   : > { %v299_v9 = vld [vmem:[%s239_s27 + $0x20] sm:$0xff]  ;;  %v300_v10 = vld [vmem:[%s239_s27 + $0x28] sm:$0xff]  ;;  %v1745_v12 = vpack.c.bf16 %v296_v8, %v295_v7  ;;  %v1760_v15 = vld [vmem:[%s1715_s24 + $0x30] sm:$0xff]  ;;  %280 = vst.msk [vmem:[#allocation4 + $0x38] sm:$0xff] %vm272_vm1, %v1655_v36 }
  0x14   : > { %v1743_v11 = vld [vmem:[%s1715_s24 + $0x20] sm:$0xff]  ;;  %v1751_v13 = vpack.c.bf16 %v300_v10, %v299_v9  ;;  %v1756_v14 = vld [vmem:[%s1715_s24 + $0x28] sm:$0xff]  ;;  %v297_v16 = vld [vmem:[%s239_s27 + $0x10] sm:$0xff]  ;;  %281 = vst.msk [vmem:[#allocation5] sm:$0xff] %vm272_vm1, %v1655_v36 }
  0x15   : > { %321 = vrot.lane.b32.xlu0 %v1731_v4, %s1654_s29  ;;  %796 = vrot.lane.b32.xlu1 %v1734_v5, %s1653_s28  ;;  %v298_v17 = vld [vmem:[%s239_s27 + $0x18] sm:$0xff]  ;;  %258 = vst.msk [vmem:[#allocation2 + $0x10] sm:$0xff] %vm255_vm3, %v1656_v39  ;;  %256 = vst.msk [vmem:[#allocation2] sm:$0xff] %vm255_vm3, %v1656_v39  ;;  %v783_v54 = vld [vmem:[#allocation5 + $0x8] sm:$0xff] }
  0x16   : > { %1469 = vmatprep.mubr.msk.bf16.mxu0 %vm323_vm0, %v1745_v12  ;;  %v1765_v18 = vld [vmem:[%s1715_s24 + $0x38] sm:$0xff]  ;;  %v1769_v19 = vpack.c.bf16 %v298_v17, %v297_v16  ;;  %257 = vst.msk [vmem:[#allocation2 + $0x8] sm:$0xff] %vm255_vm3, %v1656_v39  ;;  %259 = vst.msk [vmem:[#allocation2 + $0x18] sm:$0xff] %vm255_vm3, %v1656_v39 }
  0x17   : > { %260 = vst.msk [vmem:[#allocation2 + $0x20] sm:$0xff] %vm255_vm3, %v1656_v39  ;;  %261 = vst.msk [vmem:[#allocation2 + $0x28] sm:$0xff] %vm255_vm3, %v1656_v39 }
  0x18   : > { %262 = vst.msk [vmem:[#allocation2 + $0x30] sm:$0xff] %vm255_vm3, %v1656_v39  ;;  %263 = vst.msk [vmem:[#allocation2 + $0x38] sm:$0xff] %vm255_vm3, %v1656_v39 }
  0x19   : > { %798 = vrot.lane.b32.xlu0 %v1737_v6, %s1653_s28  ;;  %800 = vrot.lane.b32.xlu1 %v1743_v11, %s1653_s28  ;;  %264 = vst.msk [vmem:[#allocation3] sm:$0xff] %vm255_vm3, %v1655_v36  ;;  %265 = vst.msk [vmem:[#allocation3 + $0x8] sm:$0xff] %vm255_vm3, %v1655_v36 }
  0x1a   : > { %266 = vst.msk [vmem:[#allocation3 + $0x10] sm:$0xff] %vm255_vm3, %v1655_v36  ;;  %267 = vst.msk [vmem:[#allocation3 + $0x18] sm:$0xff] %vm255_vm3, %v1655_v36 }
  0x1b   : > { %268 = vst.msk [vmem:[#allocation3 + $0x20] sm:$0xff] %vm255_vm3, %v1655_v36  ;;  %269 = vst.msk [vmem:[#allocation3 + $0x28] sm:$0xff] %vm255_vm3, %v1655_v36  ;;  %v782_v56 = vld [vmem:[#allocation5] sm:$0xff] }
  0x1c   : > { %270 = vst.msk [vmem:[#allocation3 + $0x30] sm:$0xff] %vm255_vm3, %v1655_v36  ;;  %271 = vst.msk [vmem:[#allocation3 + $0x38] sm:$0xff] %vm255_vm3, %v1655_v36  ;;  %v1859_v8 = vld [vmem:[#allocation2 + $0x10] sm:$0xff]  ;;  %v1864_v16 = vld [vmem:[#allocation2] sm:$0xff] }
  0x1d   : > { %319 = vrot.lane.b32.xlu0 %v1751_v13, %s1654_s29  ;;  %802 = vrot.lane.b32.xlu1 %v1756_v14, %s1653_s28 }
  0x1e   : > { %v1906_v36 = vld [vmem:[#allocation2 + $0x20] sm:$0xff] }
  0x1f   : > { %v1911_v39 = vld [vmem:[#allocation2 + $0x30] sm:$0xff] }
  0x21   : > { %804 = vrot.lane.b32.xlu0 %v1760_v15, %s1653_s28  ;;  %806 = vrot.lane.b32.xlu1 %v1765_v18, %s1653_s28 }
  0x25   : > { %317 = vrot.lane.b32.xlu0 %v1769_v19, %s1654_s29  ;;  %315 = vrot.lane.b32.xlu1 %v1745_v12, %s1654_s29 }
  0x83   : > { %v793_v20 = vpop.permute.xlu0 %792  ;;  %v795_v21 = vpop.permute.xlu1 %794 }
  0x84   : > { %816 = vxpose.xlu0.b32.start [1/8] (short) (narrow) %v793_v20, 16 }
  0x87   : > { %v322_v22 = vpop.permute.xlu0 %321  ;;  %v797_v23 = vpop.permute.xlu1 %796 }
  0x88   : > { %817 = vxpose.xlu0.b32.cont [2/8] (short) (narrow) %v795_v21, 16  ;;  %1528 = vmatprep.subr.msk.bf16.mxu0 %vm323_vm0, %v322_v22  ;;  %v346_v24 = vsel %vm323_vm0, %v322_v22, 0  ;;  %v1874_v22 = vld [vmem:[#allocation2 + $0x18] sm:$0xff] }
  0x89   : > { %1462 = vmatpush3.bf16.xpose.msra.mxu0 %v346_v24 }
  0x8b   : > { %v799_v25 = vpop.permute.xlu0 %798  ;;  %v801_v26 = vpop.permute.xlu1 %800 }
  0x8c   : > { %818 = vxpose.xlu0.b32.cont [3/8] (short) (narrow) %v797_v23, 16 }
  0x8f   : > { %v320_v27 = vpop.permute.xlu0 %319  ;;  %v803_v28 = vpop.permute.xlu1 %802 }
  0x90   : > { %819 = vxpose.xlu0.b32.cont [4/8] (short) (narrow) %v799_v25, 16  ;;  %1529 = vmatprep.subr.msk.bf16.mxu0 %vm323_vm0, %v320_v27  ;;  %v343_v29 = vsel %vm323_vm0, %v320_v27, 0 }
  0x91   : > { %1464 = vmatpush3.bf16.xpose.msra.mxu0 %v343_v29  ;;  %v1891_v29 = vld [vmem:[#allocation2 + $0x28] sm:$0xff] }
  0x93   : > { %v805_v30 = vpop.permute.xlu0 %804  ;;  %v807_v31 = vpop.permute.xlu1 %806 }
  0x94   : > { %820 = vxpose.xlu0.b32.cont [5/8] (short) (narrow) %v801_v26, 16 }
  0x97   : > { %v318_v32 = vpop.permute.xlu0 %317  ;;  %v316_v33 = vpop.permute.xlu1 %315 }
  0x98   : > { %821 = vxpose.xlu0.b32.cont [6/8] (short) (narrow) %v803_v28, 16  ;;  %1530 = vmatprep.subr.msk.bf16.mxu0 %vm323_vm0, %v318_v32  ;;  %v340_v34 = vsel %vm323_vm0, %v318_v32, 0  ;;  %v337_v35 = vsel %vm323_vm0, %v316_v33, 0 }
  0x99   : > { %1466 = vmatpush3.bf16.xpose.msra.mxu0 %v340_v34 }
  0x9a   : > { %1531 = vmatprep.subr.msk.bf16.mxu0 %vm323_vm0, %v316_v33 }
  0x9c   : > { %822 = vxpose.xlu0.b32.cont [7/8] (short) (narrow) %v805_v30, 16 }
  0xa0   : > { %823 = vxpose.xlu0.b32.end [8/8] (short) (narrow) %v807_v31, 16 }
  0xa1   : > { %1468 = vmatpush3.bf16.xpose.msra.mxu0 %v337_v35 }
  0xa2   : > { %1493 = vmatprep.subr.mxu0 %v807_v31 }
  0xa8   : > { %1470 = vmatmul.mubr.msk.bf16.vlgmr.msra.gmra.mxu0 %vm323_vm0, %v1769_v19 }
  0xa9   : > { %1494 = vmatpush3.msra.mxu0 %v807_v31  ;;  %1473 = vmatprep.mubr.msk.bf16.mxu0 %vm323_vm0, %v1751_v13 }
  0xaa   : > { %1495 = vmatprep.subr.mxu0 %v805_v30 }
  0xab   : > { %1496 = vmatpush3.msra.mxu0 %v805_v30 }
  0xac   : > { %1497 = vmatprep.subr.mxu0 %v803_v28 }
  0xad   : > { %1498 = vmatpush3.msra.mxu0 %v803_v28 }
  0xae   : > { %1499 = vmatprep.subr.mxu0 %v801_v26 }
  0xaf   : > { %1500 = vmatpush3.msra.mxu0 %v801_v26  ;;  %v1884_v26 = vld [vmem:[#allocation2 + $0x8] sm:$0xff] }
  0xb0   : > { %1501 = vmatprep.subr.mxu0 %v799_v25  ;;  %1474 = vmatmul.mubr.msk.bf16.gmra.mxu0 %vm323_vm0, %v1731_v4 }
  0xb1   : > { %1502 = vmatpush3.msra.mxu0 %v799_v25 }
  0xb2   : > { %1503 = vmatprep.subr.mxu0 %v797_v23 }
  0xb3   : > { %1504 = vmatpush3.msra.mxu0 %v797_v23 }
  0xb4   : > { %1505 = vmatprep.subr.mxu0 %v795_v21 }
  0xb5   : > { %1506 = vmatpush3.msra.mxu0 %v795_v21 }
  0xb6   : > { %1507 = vmatprep.subr.mxu0 %v793_v20 }
  0xb7   : > { %1508 = vmatpush3.msra.mxu0 %v793_v20 }
  0xc9   : > { %1564 = vset.pattern.permute.xlu0 %v1657_v51 }
 0x100   : > { %v832_v37 = vpop.trf.xlu0 }
 0x101   : > { %1509 = vmatprep.mubr.msk.f32.mxu0 %vm421_vm2, %v832_v37 }
 0x104   : > { %v833_v38 = vpop.trf.xlu0 }
 0x105   : > { %1510 = vmatmul.mubr.msk.f32.vlgmr.msra.gmra.mxu0 %vm421_vm2, %v833_v38 }
 0x168   : > { %v1817_v40 = vpop.f32.mrf.mxu0 }
 0x169   : > { %v428_v41 = vsel %vm421_vm2, %v1817_v40, -inf }
 0x16a   : > { %429 = vmax.xlane.f32.xlu1 %v428_v41  ;;  %v1821_v42 = vpop.f32.mrf.mxu0 }
 0x16b   : > { %v422_v43 = vsel %vm421_vm2, %v1821_v42, -inf }
 0x16c   : > { %v1825_v44 = vpop.f32.mrf.mxu0 }
 0x16d   : > { %v431_v46 = vsel %vm421_vm2, %v1825_v44, -inf }
 0x16e   : > { %423 = vmax.xlane.f32.xlu1 %v422_v43  ;;  %v1827_v45 = vpop.f32.mrf.mxu0 }
 0x16f   : > { %v425_v49 = vsel %vm421_vm2, %v1827_v45, -inf }
 0x170   : > { %v1831_v47 = vpop.f32.mrf.mxu0 }
 0x171   : > { %v440_v3 = vsel %vm421_vm2, %v1831_v47, -inf }
 0x172   : > { %432 = vmax.xlane.f32.xlu1 %v431_v46  ;;  %v1833_v48 = vpop.f32.mrf.mxu0 }
 0x173   : > { %v434_v2 = vsel %vm421_vm2, %v1833_v48, -inf }
 0x174   : > { %v1837_v50 = vpop.f32.mrf.mxu0 }
 0x175   : > { %v443_v7 = vsel %vm421_vm2, %v1837_v50, -inf }
 0x176   : > { %426 = vmax.xlane.f32.xlu1 %v425_v49  ;;  %v1839_v52 = vpop.f32.mrf.mxu0  ;;  %v1920_v49 = vld [vmem:[#allocation2 + $0x38] sm:$0xff] }
 0x177   : > { %v437_v53 = vsel %vm421_vm2, %v1839_v52, -inf }
 0x178   : > { %438 = vmax.xlane.f32.xlu0 %v437_v53 }
 0x1c5   : > { %v1511_v55 = vpop.f32.mrf.mxu0 }
 0x1c6   : > { %v930_v57 = vadd.f32 %v1511_v55, %v783_v54 }
 0x1c7   : > { %v920_v58 = vpop.f32.mrf.mxu0 }
 0x1c8   : > { %932 = vst.msk [vmem:[#allocation5 + $0x8] sm:$0xff] %vm272_vm1, %v930_v57  ;;  %v929_v59 = vadd.f32 %v920_v58, %v782_v56 }
 0x1ca   : > { %931 = vst.msk [vmem:[#allocation5] sm:$0xff] %vm272_vm1, %v929_v59 }
 0x1cf   : > { %v1845_v60 = vld [vmem:[#allocation5 + $0x8] sm:$0xff] }
 0x1d0   : > { %v1040_v61 = vsel %vm272_vm1, %v1845_v60, inf }
 0x1d1   : > { %1041 = vmin.xlane.f32.xlu1 %v1040_v61  ;;  %v1849_v62 = vld [vmem:[#allocation5] sm:$0xff] }
 0x1d2   : > { %v1037_v63 = vsel %vm272_vm1, %v1849_v62, inf }
 0x1d5   : > { %1038 = vmin.xlane.f32.xlu1 %v1037_v63 }
 0x1d9   : > { %435 = vmax.xlane.f32.xlu1 %v434_v2 }
 0x1dd   : > { %441 = vmax.xlane.f32.xlu1 %v440_v3 }
 0x1e1   : > { %444 = vmax.xlane.f32.xlu1 %v443_v7 }
 0x1f3   : > { %v430_v9 = vpop.xlane.xlu1 %429 }
 0x1f4   : > { %v1862_v10 = vmax.f32 %v1859_v8, %v430_v9 }
 0x1f6   : > { %v456_v17 = vsub.f32 %v1859_v8, %v1862_v10  ;;  %767 = vst.msk [vmem:[#allocation2 + $0x10] sm:$0xff] %vm255_vm3, %v1862_v10  ;;  %490 = vperm.xlu1 %1563, %v1862_v10  }
 0x1f7   : > { %v424_v20 = vpop.xlane.xlu1 %423 }
 0x1f8   : > { %v1872_v21 = vmax.f32 %v1864_v16, %v424_v20 }
 0x1fa   : > { %v454_v23 = vsub.f32 %v1864_v16, %v1872_v21  ;;  %765 = vst.msk [vmem:[#allocation2] sm:$0xff] %vm255_vm3, %v1872_v21  ;;  %480 = vperm.xlu1 %1563, %v1872_v21  }
 0x1fb   : > { %v433_v24 = vpop.xlane.xlu1 %432 }
 0x1fc   : > { %v1882_v25 = vmax.f32 %v1874_v22, %v433_v24 }
 0x1fe   : > { %v457_v27 = vsub.f32 %v1874_v22, %v1882_v25  ;;  %768 = vst.msk [vmem:[#allocation2 + $0x18] sm:$0xff] %vm255_vm3, %v1882_v25  ;;  %495 = vperm.xlu1 %1563, %v1882_v25  }
 0x1ff   : > { %v427_v28 = vpop.xlane.xlu1 %426 }
 0x200   : > { %v1894_v30 = vmax.f32 %v1884_v26, %v427_v28 }
 0x201   : > { %v439_v31 = vpop.xlane.xlu0 %438 }
 0x202   : > { %v455_v32 = vsub.f32 %v1884_v26, %v1894_v30  ;;  %766 = vst.msk [vmem:[#allocation2 + $0x8] sm:$0xff] %vm255_vm3, %v1894_v30  ;;  %485 = vperm.xlu1 %1563, %v1894_v30   ;;  %v1902_v33 = vmax.f32 %v1891_v29, %v439_v31 }
 0x204   : > { %770 = vst.msk [vmem:[#allocation2 + $0x28] sm:$0xff] %vm255_vm3, %v1902_v33 }
 0x25a   : > { %v1042_v34 = vpop.xlane.xlu1 %1041 }
 0x25b   : > { %v1044_v3 = vsub.f32 %v1042_v34, %v1845_v60 }
 0x25e   : > { %v1039_v35 = vpop.xlane.xlu1 %1038 }
 0x25f   : > { %v1043_v20 = vsub.f32 %v1039_v35, %v1849_v62 }
 0x262   : > { %v436_v37 = vpop.xlane.xlu1 %435 }
 0x263   : > { %v1909_v38 = vmax.f32 %v1906_v36, %v436_v37 }
 0x265   : > { %v458_v41 = vsub.f32 %v1906_v36, %v1909_v38  ;;  %769 = vst.msk [vmem:[#allocation2 + $0x20] sm:$0xff] %vm255_vm3, %v1909_v38 }
 0x266   : > { %v442_v43 = vpop.xlane.xlu1 %441 }
 0x267   : > { %v1918_v46 = vmax.f32 %v1911_v39, %v442_v43  ;;  %v470_v26 = vmul.f32 1.442695, %v458_v41  ;;  %v459_v41 = vsub.f32 %v1891_v29, %v1902_v33 }
 0x269   : > { %v460_v51 = vsub.f32 %v1911_v39, %v1918_v46  ;;  %771 = vst.msk [vmem:[#allocation2 + $0x30] sm:$0xff] %vm255_vm3, %v1918_v46  ;;  %510 = vperm.xlu0 %1564, %v1918_v46   ;;  %v472_v39 = vmul.f32 1.442695, %v459_v41 }
 0x26a   : > { %v445_v53 = vpop.xlane.xlu1 %444 }
 0x26b   : > { %v1928_v54 = vmax.f32 %v1920_v49, %v445_v53  ;;  %v474_v10 = vmul.f32 1.442695, %v460_v51 }
 0x26d   : > { %v461_v55 = vsub.f32 %v1920_v49, %v1928_v54  ;;  %772 = vst.msk [vmem:[#allocation2 + $0x38] sm:$0xff] %vm255_vm3, %v1928_v54  ;;  %500 = vperm.xlu0 %1564, %v1909_v38   ;;  %515 = vperm.xlu1 %1563, %v1928_v54   ;;  %v468_v38 = vmul.f32 1.442695, %v457_v27 }
 0x26f   : > { %v476_v16 = vmul.f32 1.442695, %v461_v55 }
 0x271   : > { %665 = vrot.lane.b32.xlu0 %v1731_v4, %s1658_s30  ;;  %v491_v56 = vpop.permute.xlu1 %490  ;;  %505 = vperm.xlu1 %1563, %v1902_v33  }
 0x272   : > { %v520_v57 = vsub.f32 %v1817_v40, %v491_v56  ;;  %v1047_v40 = vmul.f32 1.442695, %v1044_v3 }
 0x274   : > { %v530_v59 = vmul.f32 1.442695, %v520_v57 }
 0x275   : > { %663 = vrot.lane.b32.xlu0 %v1751_v13, %s1658_s30  ;;  %v481_v58 = vpop.permute.xlu1 %480 }
 0x276   : > { %v518_v61 = vsub.f32 %v1821_v42, %v481_v58  ;;  %1565 = vpow2.f32 %v530_v59 }
 0x278   : > { %v526_v4 = vmul.f32 1.442695, %v518_v61 }
 0x279   : > { %661 = vrot.lane.b32.xlu0 %v1769_v19, %s1658_s30  ;;  %v496_v63 = vpop.permute.xlu1 %495  ;;  %v1045_v19 = vmul.f32 1.442695, %v1043_v20 }
 0x27a   : > { %v521_v2 = vsub.f32 %v1825_v44, %v496_v63 }
 0x27c   : > { %v532_v7 = vmul.f32 1.442695, %v521_v2 }
 0x27d   : > { %659 = vrot.lane.b32.xlu0 %v1745_v12, %s1658_s30  ;;  %v486_v9 = vpop.permute.xlu1 %485 }
 0x27e   : > { %1567 = vpow2.f32 %v532_v7  ;;  %v519_v13 = vsub.f32 %v1827_v45, %v486_v9 }
 0x27f   : > { %1569 = vpow2.f32 %v526_v4 }
 0x280   : > { %v528_v42 = vmul.f32 1.442695, %v519_v13  ;;  %v466_v13 = vmul.f32 1.442695, %v456_v17  ;;  %v462_v17 = vmul.f32 1.442695, %v454_v23 }
 0x281   : > { %1067 = vrot.lane.b32.xlu0 %v1722_v0, %s1653_s28 }
 0x282   : > { %1571 = vpow2.f32 %v528_v42 }
 0x283   : > { %1573 = vpow2.f32 %v1047_v40  ;;  %v1566_v12 = vpop.eup %1565 }
 0x284   : > { %1575 = vpow2.f32 %v1045_v19 }
 0x285   : > { %1069 = vrot.lane.b32.xlu0 %v1725_v1, %s1653_s28 }
 0x289   : > { %1071 = vrot.lane.b32.xlu0 %v1734_v5, %s1653_s28 }
 0x28b   : > { %v1568_v44 = vpop.eup %1567 }
 0x28c   : > { %v656_v45 = vpack.c.bf16 %v1568_v44, %v1566_v12  ;;  %v1570_v60 = vpop.eup %1569  ;;  %v567_v31 = vsel %vm421_vm2, %v1568_v44, 0.0 }
 0x28d   : > { %1073 = vrot.lane.b32.xlu0 %v1737_v6, %s1653_s28  ;;  %v558_v28 = vsel %vm421_vm2, %v1570_v60, 0.0 }
 0x28f   : > { %v1572_v62 = vpop.eup %1571 }
 0x290   : > { %v655_v24 = vpack.c.bf16 %v1572_v62, %v1570_v60  ;;  %v1955_v0 = vpop.eup %1573 }
 0x291   : > { %1075 = vrot.lane.b32.xlu0 %v1743_v11, %s1653_s28  ;;  %v1052_v1 = vsel %vm272_vm1, %v1955_v0, 0.0  ;;  %v1962_v5 = vpop.eup %1575  ;;  %v564_v11 = vsel %vm421_vm2, %v1566_v12, 0.0 }
 0x292   : > { %1485 = vmatprep.mubr.msk.bf16.mxu1 %vm421_vm2, %v655_v24  ;;  %v1049_v6 = vsel %vm272_vm1, %v1962_v5, 0.0 }
 0x295   : > { %1077 = vrot.lane.b32.xlu0 %v1756_v14, %s1653_s28  ;;  %1053 = vadd.xlane.f32.xlu1 %v1052_v1  ;;  %v561_v14 = vsel %vm421_vm2, %v1572_v62, 0.0  ;;  %v544_v1 = vld [vmem:[#allocation3 + $0x10] sm:$0xff] }
 0x299   : > { %1081 = vrot.lane.b32.xlu0 %v1765_v18, %s1653_s28  ;;  %1050 = vadd.xlane.f32.xlu1 %v1049_v6 }
 0x2aa   : > { %1079 = vrot.lane.b32.xlu1 %v1760_v15, %s1653_s28 }
 0x2b8   : > { %565 = vadd.xlane.f32.xlu0 %v564_v11  ;;  %v542_v11 = vld [vmem:[#allocation3] sm:$0xff] }
 0x2bc   : > { %559 = vadd.xlane.f32.xlu0 %v558_v28 }
 0x2c0   : > { %568 = vadd.xlane.f32.xlu0 %v567_v31 }
 0x2ce   : > { %562 = vadd.xlane.f32.xlu1 %v561_v14 }
 0x2e4   : > { %v511_v34 = vpop.permute.xlu0 %510 }
 0x2e5   : > { %v524_v56 = vsub.f32 %v1831_v47, %v511_v34  ;;  %v545_v34 = vld [vmem:[#allocation3 + $0x18] sm:$0xff] }
 0x2e7   : > { %v538_v63 = vmul.f32 1.442695, %v524_v56  ;;  %v543_v56 = vld [vmem:[#allocation3 + $0x8] sm:$0xff] }
 0x2e8   : > { %v516_v35 = vpop.permute.xlu1 %515  ;;  %v501_v37 = vpop.permute.xlu0 %500 }
 0x2e9   : > { %v525_v18 = vsub.f32 %v1837_v50, %v516_v35  ;;  %v522_v43 = vsub.f32 %v1833_v48, %v501_v37 }
 0x2eb   : > { %v540_v15 = vmul.f32 1.442695, %v525_v18  ;;  %v534_v53 = vmul.f32 1.442695, %v522_v43 }
 0x2ec   : > { %v506_v57 = vpop.permute.xlu1 %505  ;;  %v666_v58 = vpop.permute.xlu0 %665 }
 0x2ed   : > { %1577 = vpow2.f32 %v540_v15  ;;  %v523_v59 = vsub.f32 %v1839_v52, %v506_v57  ;;  %1477 = vmatprep.subr.bf16.mxu1 %v666_v58  ;;  %v464_v52 = vmul.f32 1.442695, %v455_v32 }
 0x2ee   : > { %1579 = vpow2.f32 %v534_v53  ;;  %1478 = vmatpush3.bf16.msra.mxu1 %v666_v58 }
 0x2ef   : > { %v536_v61 = vmul.f32 1.442695, %v523_v59 }
 0x2f0   : > { %v664_v2 = vpop.permute.xlu0 %663 }
 0x2f1   : > { %1581 = vpow2.f32 %v536_v61  ;;  %1479 = vmatprep.subr.bf16.mxu1 %v664_v2 }
 0x2f2   : > { %1480 = vmatpush3.bf16.msra.mxu1 %v664_v2  ;;  %1583 = vpow2.f32 %v538_v63 }
 0x2f3   : > { %1585 = vpow2.f32 %v464_v52  ;;  %v546_v52 = vld [vmem:[#allocation3 + $0x20] sm:$0xff] }
 0x2f4   : > { %v662_v48 = vpop.permute.xlu0 %661  ;;  %1587 = vpow2.f32 %v466_v13 }
 0x2f5   : > { %1481 = vmatprep.subr.bf16.mxu1 %v662_v48  ;;  %1589 = vpow2.f32 %v470_v26 }
 0x2f6   : > { %1482 = vmatpush3.bf16.msra.mxu1 %v662_v48  ;;  %1591 = vpow2.f32 %v474_v10 }
 0x2f7   : > { %1593 = vpow2.f32 %v462_v17 }
 0x2f8   : > { %v660_v50 = vpop.permute.xlu0 %659  ;;  %1595 = vpow2.f32 %v468_v38 }
 0x2f9   : > { %1483 = vmatprep.subr.bf16.mxu1 %v660_v50  ;;  %1597 = vpow2.f32 %v472_v39 }
 0x2fa   : > { %v1578_v47 = vpop.eup %1577  ;;  %1484 = vmatpush3.bf16.msra.mxu1 %v660_v50  ;;  %1599 = vpow2.f32 %v476_v16 }
 0x2fb   : > { %v1580_v3 = vpop.eup %1579  ;;  %v579_v7 = vsel %vm421_vm2, %v1578_v47, 0.0 }
 0x2fc   : > { %580 = vadd.xlane.f32.xlu1 %v579_v7  ;;  %v570_v4 = vsel %vm421_vm2, %v1580_v3, 0.0  ;;  %v1996_v8 = vpop.permute.xlu0 %1067 }
 0x2fd   : > { %571 = vadd.xlane.f32.xlu0 %v570_v4  ;;  %1486 = vmatmul.mubr.msk.bf16.vlgmr.msra.gmra.mxu1 %vm421_vm2, %v656_v45 }
 0x2fe   : > { %v1582_v9 = vpop.eup %1581 }
 0x2ff   : > { %v573_v40 = vsel %vm421_vm2, %v1582_v9, 0.0  ;;  %v657_v20 = vpack.c.bf16 %v1582_v9, %v1580_v3  ;;  %v1584_v42 = vpop.eup %1583  ;;  %v549_v3 = vld [vmem:[#allocation3 + $0x38] sm:$0xff] }
 0x300   : > { %v658_v30 = vpack.c.bf16 %v1578_v47, %v1584_v42  ;;  %v576_v32 = vsel %vm421_vm2, %v1584_v42, 0.0  ;;  %v2006_v36 = vpop.eup %1585  ;;  %v2023_v23 = vpop.permute.xlu0 %1069 }
 0x301   : > { %574 = vadd.xlane.f32.xlu0 %v573_v40  ;;  %1489 = vmatprep.mubr.msk.bf16.mxu1 %vm421_vm2, %v657_v20  ;;  %v1588_v19 = vpop.eup %1587  ;;  %v551_v58 = vmul.f32 %v2006_v36, %v543_v56  ;;  %v547_v20 = vld [vmem:[#allocation3 + $0x28] sm:$0xff]  ;;  %v603_v56 = vld [vmem:[#allocation4 + $0x20] sm:$0xff] }
 0x302   : > { %v2014_v46 = vpop.eup %1589 }
 0x303   : > { %v2020_v21 = vpop.eup %1591  ;;  %v554_v9 = vmul.f32 %v2014_v46, %v546_v52 }
 0x304   : > { %v1594_v22 = vpop.eup %1593  ;;  %v2028_v49 = vpop.permute.xlu0 %1071 }
 0x305   : > { %577 = vadd.xlane.f32.xlu0 %v576_v32  ;;  %1490 = vmatmul.mubr.msk.bf16.gmra.mxu1 %vm421_vm2, %v658_v30  ;;  %v1596_v25 = vpop.eup %1595  ;;  %v550_v31 = vmul.f32 %v1594_v22, %v542_v11  ;;  %v548_v32 = vld [vmem:[#allocation3 + $0x30] sm:$0xff] }
 0x306   : > { %1516 = vmatprep.mubr.msk.f32.mxu1 %vm272_vm1, %v1996_v8  ;;  %v2025_v29 = vpop.eup %1597  ;;  %v553_v37 = vmul.f32 %v1596_v25, %v545_v34  ;;  %v556_v17 = vmul.f32 %v2020_v21, %v548_v32 }
 0x307   : > { %v1600_v51 = vpop.eup %1599  ;;  %v555_v26 = vmul.f32 %v2025_v29, %v547_v20 }
 0x308   : > { %v2030_v54 = vpop.permute.xlu0 %1073  ;;  %v557_v7 = vmul.f32 %v1600_v51, %v549_v3 }
 0x30c   : > { %v2034_v44 = vpop.permute.xlu0 %1075 }
 0x30d   : > { %614 = vperm.xlu1 %1563, %v2006_v36  }
 0x310   : > { %v2040_v62 = vpop.permute.xlu0 %1077 }
 0x311   : > { %619 = vperm.xlu1 %1563, %v1588_v19  }
 0x314   : > { %v2048_v24 = vpop.permute.xlu0 %1081 }
 0x315   : > { %629 = vperm.xlu1 %1563, %v2014_v46  }
 0x319   : > { %639 = vperm.xlu1 %1563, %v2020_v21  }
 0x31b   : > { %609 = vperm.xlu0 %1564, %v1594_v22  }
 0x31e   : > { %v1054_v27 = vpop.xlane.xlu1 %1053 }
 0x31f   : > { %1601 = vrcp.f32 %v1054_v27  ;;  %624 = vperm.xlu0 %1564, %v1596_v25  }
 0x322   : > { %v1051_v33 = vpop.xlane.xlu1 %1050 }
 0x323   : > { %1603 = vrcp.f32 %v1051_v33  ;;  %634 = vperm.xlu0 %1564, %v2025_v29  }
 0x327   : > { %644 = vperm.xlu0 %1564, %v1600_v51   ;;  %v601_v51 = vld [vmem:[#allocation4 + $0x10] sm:$0xff] }
 0x32c   : > { %v1602_v55 = vpop.eup %1601 }
 0x32d   : > { %v1058_v12 = vmul.f32 %v1602_v55, %v1955_v0  ;;  %v2052_v0 = vpop.permute.xlu1 %1079 }
 0x32f   : > { %1512 = vmatprep.subr.msk.mxu1 %vm272_vm1, %v1058_v12 }
 0x330   : > { %v1604_v45 = vpop.eup %1603  ;;  %1513 = vmatpush3.xpose.msk.msra.mxu1 %vm272_vm1, %v1058_v12 }
 0x331   : > { %v1057_v60 = vmul.f32 %v1604_v45, %v1962_v5  ;;  %v552_v5 = vmul.f32 %v1588_v19, %v544_v1  ;;  %v599_v45 = vld [vmem:[#allocation4] sm:$0xff]  ;;  %v602_v1 = vld [vmem:[#allocation4 + $0x18] sm:$0xff] }
 0x333   : > { %1514 = vmatprep.subr.msk.mxu1 %vm272_vm1, %v1057_v60 }
 0x334   : > { %1515 = vmatpush3.xpose.msk.msra.mxu1 %vm272_vm1, %v1057_v60 }
 0x337   : > { %1517 = vmatmul.mubr.msk.f32.vlgmr.msra.gmra.mxu1 %vm272_vm1, %v2023_v23 }
 0x338   : > { %1519 = vmatprep.mubr.msk.f32.mxu1 %vm272_vm1, %v2028_v49 }
 0x33b   : > { %1520 = vmatmul.mubr.msk.f32.gmra.mxu1 %vm272_vm1, %v2030_v54 }
 0x33c   : > { %1522 = vmatprep.mubr.msk.f32.mxu1 %vm272_vm1, %v2034_v44 }
 0x33f   : > { %1523 = vmatmul.mubr.msk.f32.gmra.mxu1 %vm272_vm1, %v2040_v62 }
 0x340   : > { %1525 = vmatprep.mubr.msk.f32.mxu1 %vm272_vm1, %v2052_v0 }
 0x341   : > { %v566_v6 = vpop.xlane.xlu0 %565 }
 0x342   : > { %v584_v28 = vadd.f32 %v566_v6, %v552_v5 }
 0x343   : > { %1526 = vmatmul.mubr.msk.f32.gmra.mxu1 %vm272_vm1, %v2048_v24 }
 0x344   : > { %593 = vst.msk [vmem:[#allocation3 + $0x10] sm:$0xff] %vm255_vm3, %v584_v28  ;;  %v600_v28 = vld [vmem:[#allocation4 + $0x8] sm:$0xff] }
 0x345   : > { %v560_v14 = vpop.xlane.xlu0 %559 }
 0x346   : > { %v582_v35 = vadd.f32 %v560_v14, %v550_v31 }
 0x348   : > { %591 = vst.msk [vmem:[#allocation3] sm:$0xff] %vm255_vm3, %v582_v35 }
 0x349   : > { %v569_v18 = vpop.xlane.xlu0 %568 }
 0x34a   : > { %v585_v43 = vadd.f32 %v569_v18, %v553_v37  ;;  %v605_v37 = vld [vmem:[#allocation4 + $0x30] sm:$0xff] }
 0x34b   : > { %v956_v15 = vld [vmem:[#allocation3 + $0x10] sm:$0xff] }
 0x34c   : > { %594 = vst.msk [vmem:[#allocation3 + $0x18] sm:$0xff] %vm255_vm3, %v585_v43  ;;  %1605 = vrcp.f32 %v956_v15 }
 0x34f   : > { %v954_v53 = vld [vmem:[#allocation3] sm:$0xff] }
 0x350   : > { %1607 = vrcp.f32 %v954_v53 }
 0x353   : > { %v957_v57 = vld [vmem:[#allocation3 + $0x18] sm:$0xff] }
 0x354   : > { %1609 = vrcp.f32 %v957_v57 }
 0x357   : > { %v563_v59 = vpop.xlane.xlu1 %562 }
 0x358   : > { %v583_v61 = vadd.f32 %v563_v59, %v551_v58 }
 0x359   : > { %v1606_v63 = vpop.eup %1605 }
 0x35a   : > { %592 = vst.msk [vmem:[#allocation3 + $0x8] sm:$0xff] %vm255_vm3, %v583_v61  ;;  %982 = vperm.xlu1 %1563, %v1606_v63   ;;  %v606_v61 = vld [vmem:[#allocation4 + $0x38] sm:$0xff] }
 0x35d   : > { %v1608_v2 = vpop.eup %1607 }
 0x35e   : > { %972 = vperm.xlu1 %1563, %v1608_v2  }
 0x361   : > { %v1610_v48 = vpop.eup %1609  ;;  %v955_v50 = vld [vmem:[#allocation3 + $0x8] sm:$0xff] }
 0x362   : > { %987 = vperm.xlu0 %1564, %v1610_v48   ;;  %1611 = vrcp.f32 %v955_v50 }
 0x36f   : > { %v1612_v47 = vpop.eup %1611 }
 0x370   : > { %977 = vperm.xlu0 %1564, %v1612_v47   ;;  %v604_v47 = vld [vmem:[#allocation4 + $0x28] sm:$0xff] }
 0x385   : > { %v581_v4 = vpop.xlane.xlu1 %580 }
 0x386   : > { %v589_v13 = vadd.f32 %v581_v4, %v557_v7  ;;  %v572_v40 = vpop.xlane.xlu0 %571 }
 0x387   : > { %v586_v42 = vadd.f32 %v572_v40, %v554_v9 }
 0x388   : > { %598 = vst.msk [vmem:[#allocation3 + $0x38] sm:$0xff] %vm255_vm3, %v589_v13 }
 0x389   : > { %595 = vst.msk [vmem:[#allocation3 + $0x20] sm:$0xff] %vm255_vm3, %v586_v42  ;;  %v615_v21 = vpop.permute.xlu1 %614  ;;  %v1211_v42 = vstv %s1210_s5 }
 0x38a   : > { %v575_v30 = vpop.xlane.xlu0 %574  ;;  %v648_v15 = vmul.f32 %v615_v21, %v600_v28 }
 0x38b   : > { %v587_v10 = vadd.f32 %v575_v30, %v555_v26 }
 0x38d   : > { %596 = vst.msk [vmem:[#allocation3 + $0x28] sm:$0xff] %vm255_vm3, %v587_v10  ;;  %v620_v33 = vpop.permute.xlu1 %619 }
 0x38e   : > { %v578_v36 = vpop.xlane.xlu0 %577  ;;  %v649_v60 = vmul.f32 %v620_v33, %v601_v51 }
 0x38f   : > { %v588_v38 = vadd.f32 %v578_v36, %v556_v17  ;;  %v961_v41 = vld [vmem:[#allocation3 + $0x38] sm:$0xff] }
 0x390   : > { %1613 = vrcp.f32 %v961_v41  ;;  %v958_v46 = vld [vmem:[#allocation3 + $0x20] sm:$0xff] }
 0x391   : > { %597 = vst.msk [vmem:[#allocation3 + $0x30] sm:$0xff] %vm255_vm3, %v588_v38  ;;  %v630_v12 = vpop.permute.xlu1 %629 }
 0x392   : > { %v651_v48 = vmul.f32 %v630_v12, %v603_v56  ;;  %v1621_v56 = vld [vmem:[%s1715_s24 + $0x8] sm:$0xff] }
 0x394   : > { %v959_v19 = vld [vmem:[#allocation3 + $0x28] sm:$0xff] }
 0x395   : > { %1615 = vrcp.f32 %v959_v19  ;;  %v640_v18 = vpop.permute.xlu1 %639 }
 0x396   : > { %v610_v29 = vpop.permute.xlu0 %609  ;;  %v653_v58 = vmul.f32 %v640_v18, %v605_v37 }
 0x397   : > { %v647_v6 = vmul.f32 %v610_v29, %v599_v45 }
 0x398   : > { %v960_v39 = vld [vmem:[#allocation3 + $0x30] sm:$0xff] }
 0x399   : > { %1617 = vrcp.f32 %v960_v39 }
 0x39a   : > { %1619 = vrcp.f32 %v958_v46  ;;  %v625_v55 = vpop.permute.xlu0 %624 }
 0x39b   : > { %v650_v34 = vmul.f32 %v625_v55, %v602_v1 }
 0x39d   : > { %v1614_v16 = vpop.eup %1613 }
 0x39e   : > { %1007 = vperm.xlu0 %1564, %v1614_v16   ;;  %v635_v31 = vpop.permute.xlu0 %634 }
 0x39f   : > { %v652_v9 = vmul.f32 %v635_v31, %v604_v47 }
 0x3a2   : > { %v1616_v22 = vpop.eup %1615  ;;  %v645_v63 = vpop.permute.xlu0 %644 }
 0x3a3   : > { %997 = vperm.xlu0 %1564, %v1616_v22   ;;  %v654_v52 = vmul.f32 %v645_v63, %v606_v61 }
 0x3a6   : > { %v1618_v25 = vpop.eup %1617 }
 0x3a7   : > { %1002 = vperm.xlu1 %1563, %v1618_v25   ;;  %v1620_v27 = vpop.eup %1619 }
 0x3ab   : > { %992 = vperm.xlu1 %1563, %v1620_v27  }
 0x3bd   : > { %v1487_v5 = vpop.f32.mrf.mxu1 }
 0x3be   : > { %v750_v11 = vadd.f32 %v1487_v5, %v649_v60 }
 0x3bf   : > { %v717_v14 = vpop.f32.mrf.mxu1 }
 0x3c0   : > { %759 = vst.msk [vmem:[#allocation4 + $0x10] sm:$0xff] %vm272_vm1, %v750_v11  ;;  %v748_v35 = vadd.f32 %v717_v14, %v647_v6 }
 0x3c1   : > { %v1488_v43 = vpop.f32.mrf.mxu1 }
 0x3c2   : > { %757 = vst.msk [vmem:[#allocation4] sm:$0xff] %vm272_vm1, %v748_v35  ;;  %v751_v53 = vadd.f32 %v1488_v43, %v650_v34 }
 0x3c3   : > { %v720_v57 = vpop.f32.mrf.mxu1 }
 0x3c4   : > { %760 = vst.msk [vmem:[#allocation4 + $0x18] sm:$0xff] %vm272_vm1, %v751_v53  ;;  %v749_v59 = vadd.f32 %v720_v57, %v648_v15 }
 0x3c5   : > { %v1491_v2 = vpop.f32.mrf.mxu1 }
 0x3c6   : > { %758 = vst.msk [vmem:[#allocation4 + $0x8] sm:$0xff] %vm272_vm1, %v749_v59  ;;  %v754_v50 = vadd.f32 %v1491_v2, %v653_v58  ;;  %v1622_v2 = vld [vmem:[%s1715_s24] sm:$0xff] }
 0x3c7   : > { %v733_v3 = vpop.f32.mrf.mxu1 }
 0x3c8   : > { %763 = vst.msk [vmem:[#allocation4 + $0x30] sm:$0xff] %vm272_vm1, %v754_v50  ;;  %v752_v7 = vadd.f32 %v733_v3, %v651_v48 }
 0x3c9   : > { %v1492_v4 = vpop.f32.mrf.mxu1  ;;  %v946_v6 = vld [vmem:[#allocation4] sm:$0xff] }
 0x3ca   : > { %761 = vst.msk [vmem:[#allocation4 + $0x20] sm:$0xff] %vm272_vm1, %v752_v7  ;;  %v755_v13 = vadd.f32 %v1492_v4, %v654_v52  ;;  %v1623_v7 = vld [vmem:[%s1715_s24 + $0x18] sm:$0xff] }
 0x3cb   : > { %v736_v40 = vpop.f32.mrf.mxu1  ;;  %v949_v31 = vld [vmem:[#allocation4 + $0x18] sm:$0xff] }
 0x3cc   : > { %764 = vst.msk [vmem:[#allocation4 + $0x38] sm:$0xff] %vm272_vm1, %v755_v13  ;;  %v753_v20 = vadd.f32 %v736_v40, %v652_v9 }
 0x3cd   : > { %v947_v1 = vld [vmem:[#allocation4 + $0x8] sm:$0xff] }
 0x3ce   : > { %762 = vst.msk [vmem:[#allocation4 + $0x28] sm:$0xff] %vm272_vm1, %v753_v20 }
 0x3cf   : > { %v952_v20 = vld [vmem:[#allocation4 + $0x30] sm:$0xff] }
 0x3d1   : > { %v950_v59 = vld [vmem:[#allocation4 + $0x20] sm:$0xff] }
 0x3d3   : > { %v953_v3 = vld [vmem:[#allocation4 + $0x38] sm:$0xff] }
 0x3d5   : > { %v951_v43 = vld [vmem:[#allocation4 + $0x28] sm:$0xff] }
 0x3dd   : > { %v988_v45 = vpop.permute.xlu0 %987 }
 0x3de   : > { %v1013_v14 = vmul.f32 %v988_v45, %v949_v31 }
 0x3f7   : > { %v1518_v26 = vpop.f32.mrf.mxu1 }
 0x3f8   : > { %v1213_v30 = vmul.f32 %v1518_v26, %v1211_v42  ;;  %v1624_v26 = vld [vmem:[%s1715_s24 + $0x10] sm:$0xff] }
 0x3f9   : > { %v1171_v32 = vpop.f32.mrf.mxu1 }
 0x3fa   : > { %v1229_v10 = vadd.f32 %v1213_v30, %v2023_v23  ;;  %v1212_v17 = vmul.f32 %v1211_v42, %v1171_v32 }
 0x3fb   : > { %v1521_v36 = vpop.f32.mrf.mxu1 }
 0x3fc   : > { %v1228_v38 = vadd.f32 %v1212_v17, %v1996_v8  ;;  %v1215_v41 = vmul.f32 %v1521_v36, %v1211_v42  ;;  %1246 = vrot.lane.b32.xlu0 %v1229_v10, %s1659_s6 }
 0x3fd   : > { %v1181_v19 = vpop.f32.mrf.mxu1 }
 0x3fe   : > { %v1231_v39 = vadd.f32 %v1215_v41, %v2030_v54  ;;  %v1214_v46 = vmul.f32 %v1211_v42, %v1181_v19  ;;  %1244 = vrot.lane.b32.xlu1 %v1228_v38, %s1659_s6  ;;  %v1625_v41 = vld [vmem:[%s1715_s24 + $0x28] sm:$0xff] }
 0x3ff   : > { %v1524_v16 = vpop.f32.mrf.mxu1 }
 0x400   : > { %v1230_v22 = vadd.f32 %v1214_v46, %v2028_v49  ;;  %v1217_v25 = vmul.f32 %v1524_v16, %v1211_v42  ;;  %1250 = vrot.lane.b32.xlu0 %v1231_v39, %s1659_s6  ;;  %v983_v49 = vpop.permute.xlu1 %982 }
 0x401   : > { %v1191_v27 = vpop.f32.mrf.mxu1 }
 0x402   : > { %v1233_v23 = vadd.f32 %v1217_v25, %v2040_v62  ;;  %v1216_v21 = vmul.f32 %v1211_v42, %v1191_v27  ;;  %1248 = vrot.lane.b32.xlu1 %v1230_v22, %s1659_s6  ;;  %v978_v62 = vpop.permute.xlu0 %977  ;;  %v1626_v22 = vld [vmem:[%s1715_s24 + $0x20] sm:$0xff] }
 0x403   : > { %v1527_v29 = vpop.f32.mrf.mxu1 }
 0x404   : > { %v1232_v8 = vadd.f32 %v1216_v21, %v2034_v44  ;;  %v1219_v33 = vmul.f32 %v1527_v29, %v1211_v42  ;;  %1254 = vrot.lane.b32.xlu0 %v1233_v23, %s1659_s6  ;;  %v973_v60 = vpop.permute.xlu1 %972  ;;  %v1011_v44 = vmul.f32 %v978_v62, %v947_v1  ;;  %v1627_v21 = vld [vmem:[%s1715_s24 + $0x38] sm:$0xff] }
 0x405   : > { %v1201_v51 = vpop.f32.mrf.mxu1  ;;  %v1010_v28 = vmul.f32 %v973_v60, %v946_v6 }
 0x406   : > { %v1235_v54 = vadd.f32 %v1219_v33, %v2048_v24  ;;  %v1218_v55 = vmul.f32 %v1211_v42, %v1201_v51  ;;  %1252 = vrot.lane.b32.xlu1 %v1232_v8, %s1659_s6  ;;  %v1018_v24 = vstv %s945_s7  ;;  %v1628_v51 = vld [vmem:[%s1715_s24 + $0x30] sm:$0xff] }
 0x407   : > { %v1020_v34 = vmul.f32 %v1018_v24, %v1011_v44  ;;  %v1019_v18 = vmul.f32 %v1018_v24, %v1010_v28  ;;  %v1022_v53 = vmul.f32 %v1018_v24, %v1013_v14 }
 0x408   : > { %v1234_v12 = vadd.f32 %v1218_v55, %v2052_v0  ;;  %1258 = vrot.lane.b32.xlu0 %v1235_v54, %s1659_s6  ;;  %v948_v0 = vld [vmem:[#allocation4 + $0x10] sm:$0xff] }
 0x409   : > { %v1012_v37 = vmul.f32 %v983_v49, %v948_v0  ;;  %v1028_v57 = vadd.f32 %v1621_v56, %v1020_v34  ;;  %v1027_v48 = vadd.f32 %v1622_v2, %v1019_v18  ;;  %v1030_v4 = vadd.f32 %v1623_v7, %v1022_v53 }
 0x40a   : > { %1256 = vrot.lane.b32.xlu1 %v1234_v12, %s1659_s6 }
 0x40b   : > { %v1021_v63 = vmul.f32 %v1018_v24, %v1012_v37 }
 0x40d   : > { %v1029_v30 = vadd.f32 %v1624_v26, %v1021_v63 }
 0x419   : > { %v1008_v5 = vpop.permute.xlu0 %1007 }
 0x41a   : > { %v1017_v9 = vmul.f32 %v1008_v5, %v953_v3 }
 0x41c   : > { %v1026_v38 = vmul.f32 %v1018_v24, %v1017_v9 }
 0x41e   : > { %v998_v35 = vpop.permute.xlu0 %997  ;;  %v1034_v29 = vadd.f32 %v1627_v21, %v1026_v38 }
 0x41f   : > { %v1015_v58 = vmul.f32 %v998_v35, %v951_v43 }
 0x421   : > { %v1024_v13 = vmul.f32 %v1018_v24, %v1015_v58 }
 0x422   : > { %v1003_v11 = vpop.permute.xlu1 %1002 }
 0x423   : > { %v1016_v32 = vmul.f32 %v1003_v11, %v952_v20  ;;  %v1032_v19 = vadd.f32 %v1625_v41, %v1024_v13 }
 0x425   : > { %v1025_v16 = vmul.f32 %v1018_v24, %v1016_v32 }
 0x426   : > { %v993_v15 = vpop.permute.xlu1 %992 }
 0x427   : > { %v1014_v50 = vmul.f32 %v993_v15, %v950_v59  ;;  %v1033_v54 = vadd.f32 %v1628_v51, %v1025_v16 }
 0x429   : > { %v1023_v10 = vmul.f32 %v1018_v24, %v1014_v50 }
 0x42b   : > { %v1031_v25 = vadd.f32 %v1626_v22, %v1023_v10 }
 0x46e   : > { %v1247_v61 = vpop.permute.xlu0 %1246 }
 0x46f   : > { %v1269_v47 = vsel %vm272_vm1, %v1028_v57, %v1247_v61 }
 0x470   : > { %1278 = vst.msk [vmem:[%s2093_s10 + $0x8] sm:$0xff] %vm1276_vm4, %v1269_v47  ;;  %v1245_v52 = vpop.permute.xlu1 %1244 }
 0x471   : > { %v1268_v40 = vsel %vm272_vm1, %v1027_v48, %v1245_v52 }
 0x472   : > { %1277 = vst.msk [vmem:[%s2093_s10] sm:$0xff] %vm1276_vm4, %v1268_v40  ;;  %v1251_v42 = vpop.permute.xlu0 %1250 }
 0x473   : > { %v1271_v17 = vsel %vm272_vm1, %v1030_v4, %v1251_v42 }
 0x474   : > { %1280 = vst.msk [vmem:[%s2093_s10 + $0x18] sm:$0xff] %vm1276_vm4, %v1271_v17  ;;  %v1249_v36 = vpop.permute.xlu1 %1248 }
 0x475   : > { %v1270_v39 = vsel %vm272_vm1, %v1029_v30, %v1249_v36 }
 0x476   : > { %1279 = vst.msk [vmem:[%s2093_s10 + $0x10] sm:$0xff] %vm1276_vm4, %v1270_v39  ;;  %v1255_v46 = vpop.permute.xlu0 %1254 }
 0x477   : > { %v1273_v27 = vsel %vm272_vm1, %v1032_v19, %v1255_v46 }
 0x478   : > { %1282 = vst.msk [vmem:[%s2093_s10 + $0x28] sm:$0xff] %vm1276_vm4, %v1273_v27  ;;  %v1253_v23 = vpop.permute.xlu1 %1252 }
 0x479   : > { %v1272_v8 = vsel %vm272_vm1, %v1031_v25, %v1253_v23 }
 0x47a   : > { %1281 = vst.msk [vmem:[%s2093_s10 + $0x20] sm:$0xff] %vm1276_vm4, %v1272_v8  ;;  %v1259_v33 = vpop.permute.xlu0 %1258 }
 0x47b   : > { %v1275_v55 = vsel %vm272_vm1, %v1034_v29, %v1259_v33 }
 0x47c   : > { %1284 = vst.msk [vmem:[%s2093_s10 + $0x38] sm:$0xff] %vm1276_vm4, %v1275_v55  ;;  %v1257_v12 = vpop.permute.xlu1 %1256 }
 0x47d   : > { %v1274_v49 = vsel %vm272_vm1, %v1033_v54, %v1257_v12 }
 0x47e   : > { %1283 = vst.msk [vmem:[%s2093_s10 + $0x30] sm:$0xff] %vm1276_vm4, %v1274_v49 }
 0x47f PF: > { %s16_s21 = sadd.s32 1, %s1651_s21   ;;  %s2140_s19 = smov %s1647_s20 }
 0x480   : > { %p13_p5 = scmp.ge.s32.totalorder %s16_s21, 4   ;;  %s2141_s20 = smov %s2143_s2 }
 0x482   :  { %15 = sbr.rel (!%p13_p5) target bundleno = 3 (0x3), region = 81 }

// kernel: dahead_forward.5
= control target key start
LH: loop header
LB: loop body
LE: loop exit
PB: predicated region body
PF: predicated region fallthrough
CT: control target
= control target key end

     0   :  { %13 = vsyncpa [#allocation3], 0  ;;  %s1856_s0 = inlined_call_operand.vmem [shape: bf16[2,64,144], index: 0, kind: input, shape index: {}]   ;;  %s1857_s1 = inlined_call_operand.vmem [shape: bf16[2,64,144], index: 1, kind: input, shape index: {}]   ;;  %s1858_s2 = inlined_call_operand.vmem [shape: bf16[144,256], index: 2, kind: input, shape index: {}]   ;;  %s1859_s3 = inlined_call_operand.vmem [shape: f32[1,256], index: 3, kind: input, shape index: {}]   ;;  %s1860_s4 = inlined_call_operand.vmem [shape: f32[1,256], index: 4, kind: input, shape index: {}]   ;;  %s1861_s5 = inlined_call_operand.vmem [shape: bf16[144,256], index: 5, kind: input, shape index: {}]   ;;  %s1862_s6 = inlined_call_operand.vmem [shape: f32[1,256], index: 6, kind: input, shape index: {}]   ;;  %s1863_s7 = inlined_call_operand.vmem [shape: f32[1,256], index: 7, kind: input, shape index: {}]   ;;  %s1864_s8 = inlined_call_operand.hbm [shape: f32[2,64,256], index: 8, kind: output, shape index: {}]  }
   0x1   :  { %15 = vsyncpa [#allocation3 + $0x1], 0  ;;  %s1488_s27 = smov 0   ;;  %s1490_s28 = smov 0  }
   0x2   :  { %s1492_s29 = smov 0   ;;  %s1494_s30 = smov 0  }
   0x3   :  { %s1496_s9 = smov 0   ;;  %s1498_s10 = smov 0  }
   0x4 LB: > { %s1149_s11 = sadd.s32 4294967295, %s1438_s10   ;;  %s1150_s12 = sadd.s32 4294967294, %s1438_s10   ;;  %s1438_s10 = sphi %s1498_s10, %s21_s10   ;;  %s1434_s9 = sphi %s1496_s9, %s1874_s9   ;;  %s1430_s30 = sphi %s1494_s30, %s1873_s30   ;;  %s1426_s29 = sphi %s1492_s29, %s1872_s29   ;;  %s1422_s28 = sphi %s1490_s28, %s1871_s28   ;;  %s1418_s27 = sphi %s1488_s27, %s1870_s27  }
   0x5   : > { %s33_s13 = sadd.s32 1, %s1434_s9  ;;  %s224_s14 = sadd.s32 1, %s1426_s29 }
   0x6   : > { %p35_p0 = scmp.ge.s32.totalorder %s33_s13, 2  ;;  %p234_p1 = scmp.ne.s32.totalorder %s1426_s29, %s1422_s28 }
   0x7   : > { %p235_p2 = scmp.eq.s32.totalorder %s1149_s11, 1  ;;  %p240_p3 = scmp.ne.s32.totalorder %s1422_s28, %s1418_s27 }
   0x8   : > { %s1876_s13 = smov (%p35_p0, %s33_s13), 0  ;;  %p241_p5 = scmp.eq.s32.totalorder %s1150_s12, 1 }
   0x9   : > { %1866 = sst [smem:[#allocation5_spill]] %s1876_s13  ;;  %p1528_p4 = por %p235_p2, %p234_p1 }
   0xa   : > { %s219_s16 = ssub.s32 %s1434_s9, %s1876_s13  ;;  %p1153_p6 = scmp.ge.s32.totalorder %s1438_s10, 1 }
   0xb   : > { %p222_p7 = scmp.eq.s32.totalorder %s219_s16, 0  ;;  %p1535_p8 = por %p241_p5, %p240_p3 }
   0xc   : > { %p305_p9 = scmp.lt.s32.totalorder %s1438_s10, 3 }
   0xd   : > { %s1541_s18 = scalar_select %p222_p7, %s1426_s29, %s224_s14  }
   0xe   : > { %p306_p10 = pnand %p1153_p6, %p305_p9 }
   0xf   : > { %p355_p11 = scmp.lt.s32.totalorder (!%p306_p10), %s1430_s30, 1  ;;  %s351_s24 = sand.u32 (!%p306_p10), 1, %s1422_s28  }
  0x10   : > { %309 = sbr.rel (%p306_p10) target bundleno = 304 (0x130), region = 52  ;;  %s1154_s25 = sshll.u32 (!%p306_p10), %s351_s24, 7 }
  0x11   : > { %s1732_s26 = scalar_lea.vmem (!%p306_p10), [#allocation2], %s1154_s25  ;;  %s1226_s11 = sshll.u32 (!%p306_p10), %s1430_s30, 11 }
  0x12   : > { %s1046_s12 = sshll.u32 (!%p306_p10), %s1732_s26, 4  ;;  %s1803_s19 = scalar_lea.hbm (!%p306_p10), %s1864_s8, %s1226_s11  ;;  %s1805_s12 = int_to_ptr.vmem [resolvable:$true] %s1046_s12 }
  0x13   : > { %s1362_s20 = scalar_lea.vmem (!%p306_p10), %s1805_s12, 2048  ;;  %s1440_s21 = smov (!%p306_p10), [#allocation2]  }
  0x14   : > { %p1363_p12 = scmp.ne.s32.totalorder (!%p306_p10), %s1805_s12, %s1362_s20  ;;  %s1366_s22 = sshll.u32 (!%p306_p10), %s1440_s21, 4  ;;  %s1367_s22 = int_to_ptr.vmem [resolvable:$false] %s1366_s22 }
  0x15   : > { %v1284_v0 = vld [vmem:[%s1858_s2 + $0x74] ss:$8 sps:$4 sm:$0xff]   ;;  %v1288_v2 = vld [vmem:[%s1858_s2 + $0x70] ss:$8 sps:$4 sm:$0xff]   ;;  %v1290_v4 = vld [vmem:[%s1858_s2 + $0x64] ss:$8 sps:$4 sm:$0xff]   ;;  %v618_v52 = vlaneseq  ;;  %p1369_p1 = scmp.lt.s32.totalorder %s1805_s12, %s1367_s22 }
  0x16   : > { %v1286_v1 = vld [vmem:[%s1861_s5 + $0x74] ss:$8 sps:$4 sm:$0xff]   ;;  %543 = vmatprep.subr.bf16.mxu0 %v1284_v0  ;;  %v1289_v3 = vld [vmem:[%s1861_s5 + $0x70] ss:$8 sps:$4 sm:$0xff]   ;;  %v1292_v5 = vld [vmem:[%s1861_s5 + $0x64] ss:$8 sps:$4 sm:$0xff]   ;;  %p1364_p13 = pnand %p1363_p12, %p1528_p4 }
  0x17   : > { %852 = vmatprep.subr.bf16.mxu1 %v1286_v1  ;;  %544 = vmatpush1.bf16.msra.mxu0 %v1288_v2  ;;  %v1294_v6 = vld [vmem:[%s1858_s2 + $0x60] ss:$8 sps:$4 sm:$0xff]   ;;  %v1296_v8 = vld [vmem:[%s1858_s2 + $0x54] ss:$8 sps:$4 sm:$0xff]   ;;  %v1300_v10 = vld [vmem:[%s1858_s2 + $0x50] ss:$8 sps:$4 sm:$0xff]  }
  0x18   : > { %853 = vmatpush1.bf16.msra.mxu1 %v1289_v3  ;;  %545 = vmatprep.subr.bf16.mxu0 %v1290_v4  ;;  %v1295_v7 = vld [vmem:[%s1861_s5 + $0x60] ss:$8 sps:$4 sm:$0xff]   ;;  %v1298_v9 = vld [vmem:[%s1861_s5 + $0x54] ss:$8 sps:$4 sm:$0xff]   ;;  %v1301_v11 = vld [vmem:[%s1861_s5 + $0x50] ss:$8 sps:$4 sm:$0xff]   ;;  %p1365_p0 = pneg %p1364_p13 }
  0x19   : > { %854 = vmatprep.subr.bf16.mxu1 %v1292_v5  ;;  %v1302_v12 = vld [vmem:[%s1858_s2 + $0x44] ss:$8 sps:$4 sm:$0xff]   ;;  %v1306_v14 = vld [vmem:[%s1858_s2 + $0x40] ss:$8 sps:$4 sm:$0xff]   ;;  %v1308_v16 = vld [vmem:[%s1858_s2 + $0x34] ss:$8 sps:$4 sm:$0xff]  }
  0x1a   : > { %v1304_v13 = vld [vmem:[%s1861_s5 + $0x44] ss:$8 sps:$4 sm:$0xff]   ;;  %v1307_v15 = vld [vmem:[%s1861_s5 + $0x40] ss:$8 sps:$4 sm:$0xff]   ;;  %v1310_v17 = vld [vmem:[%s1861_s5 + $0x34] ss:$8 sps:$4 sm:$0xff]  }
  0x1b   : > { %546 = vmatpush1.bf16.msra.mxu0 %v1294_v6  ;;  %v1312_v18 = vld [vmem:[%s1858_s2 + $0x30] ss:$8 sps:$4 sm:$0xff]   ;;  %s356_s23 = scalar_select %p355_p11, %s1430_s30, 1  ;;  %v1314_v20 = vld [vmem:[%s1858_s2 + $0x24] ss:$8 sps:$4 sm:$0xff]   ;;  %vm530_vm0 = vcmask 130048  }
  0x1c   : > { %855 = vmatpush1.bf16.msra.mxu1 %v1295_v7  ;;  %547 = vmatprep.subr.bf16.mxu0 %v1296_v8  ;;  %v1313_v19 = vld [vmem:[%s1861_s5 + $0x30] ss:$8 sps:$4 sm:$0xff]   ;;  %v1316_v21 = vld [vmem:[%s1861_s5 + $0x24] ss:$8 sps:$4 sm:$0xff]   ;;  %v1318_v22 = vld [vmem:[%s1858_s2 + $0x20] ss:$8 sps:$4 sm:$0xff]  }
  0x1d   : > { %856 = vmatprep.subr.bf16.mxu1 %v1298_v9  ;;  %s1224_s16 = sshll.u32 %s356_s23, 6  ;;  %v1319_v23 = vld [vmem:[%s1861_s5 + $0x20] ss:$8 sps:$4 sm:$0xff]   ;;  %v1320_v24 = vld [vmem:[%s1858_s2 + $0x14] ss:$8 sps:$4 sm:$0xff]   ;;  %v619_v53 = vshrl.u32 %v618_v52, 7 }
  0x1e   : > { %v1322_v25 = vld [vmem:[%s1861_s5 + $0x14] ss:$8 sps:$4 sm:$0xff]   ;;  %s1626_s23 = scalar_lea.vmem %s1856_s0, %s1224_s16  ;;  %v1324_v26 = vld [vmem:[%s1858_s2 + $0x10] ss:$8 sps:$4 sm:$0xff]   ;;  %v1326_v28 = vld [vmem:[%s1858_s2 + $0x4] ss:$8 sps:$4 sm:$0xff]   ;;  %s1640_s13 = scalar_lea.vmem %s1857_s1, %s1224_s16 }
  0x1f   : > { %548 = vmatpush1.bf16.msra.mxu0 %v1300_v10  ;;  %v1325_v27 = vld [vmem:[%s1861_s5 + $0x10] ss:$8 sps:$4 sm:$0xff]   ;;  %v1328_v29 = vld [vmem:[%s1861_s5 + $0x4] ss:$8 sps:$4 sm:$0xff]   ;;  %v1330_v32 = vld [vmem:[%s1858_s2] ss:$8 sps:$4 sm:$0xff]  }
  0x20   : > { %857 = vmatpush1.bf16.msra.mxu1 %v1301_v11  ;;  %549 = vmatprep.subr.bf16.mxu0 %v1302_v12  ;;  %v1340_v30 = vld [vmem:[%s1626_s23 + $0x4] ss:$8 sps:$4 sm:$0xff]   ;;  %v1331_v33 = vld [vmem:[%s1861_s5] ss:$8 sps:$4 sm:$0xff]   ;;  %v1344_v40 = vld [vmem:[%s1626_s23 + $0x14] ss:$8 sps:$4 sm:$0xff]  }
  0x21   : > { %858 = vmatprep.subr.bf16.mxu1 %v1304_v13  ;;  %v1343_v31 = vld [vmem:[%s1640_s13 + $0x4] ss:$8 sps:$4 sm:$0xff]   ;;  %1185 = vmatprep.mubr.msk.bf16.mxu0 %vm530_vm0, %v1340_v30  ;;  %v1336_v36 = vld [vmem:[%s1858_s2 + $0x80] ss:$8 sps:$4 sm:$0xff]   ;;  %v1346_v41 = vld [vmem:[%s1640_s13 + $0x14] ss:$8 sps:$4 sm:$0xff]  }
  0x22   : > { %v1332_v34 = vld [vmem:[%s1858_s2 + $0x84] ss:$8 sps:$4 sm:$0xff]   ;;  %1215 = vmatprep.mubr.msk.bf16.mxu1 %vm530_vm0, %v1343_v31  ;;  %v1337_v37 = vld [vmem:[%s1861_s5 + $0x80] ss:$8 sps:$4 sm:$0xff]   ;;  %v1348_v42 = vld [vmem:[%s1626_s23 + $0x10] ss:$8 sps:$4 sm:$0xff]  }
  0x23   : > { %550 = vmatpush1.bf16.msra.mxu0 %v1306_v14  ;;  %v1334_v35 = vld [vmem:[%s1861_s5 + $0x84] ss:$8 sps:$4 sm:$0xff]   ;;  %v1338_v38 = vld [vmem:[%s1626_s23] ss:$8 sps:$4 sm:$0xff]   ;;  %v1349_v43 = vld [vmem:[%s1640_s13 + $0x10] ss:$8 sps:$4 sm:$0xff]  }
  0x24   : > { %859 = vmatpush1.bf16.msra.mxu1 %v1307_v15  ;;  %551 = vmatprep.subr.bf16.mxu0 %v1308_v16  ;;  %v1341_v39 = vld [vmem:[%s1640_s13] ss:$8 sps:$4 sm:$0xff]   ;;  %v1350_v44 = vld [vmem:[%s1626_s23 + $0x24] ss:$8 sps:$4 sm:$0xff]   ;;  %v1356_v48 = vld [vmem:[%s1626_s23 + $0x34] ss:$8 sps:$4 sm:$0xff]  }
  0x25   : > { %860 = vmatprep.subr.bf16.mxu1 %v1310_v17  ;;  %v1352_v45 = vld [vmem:[%s1640_s13 + $0x24] ss:$8 sps:$4 sm:$0xff]   ;;  %v1354_v46 = vld [vmem:[%s1626_s23 + $0x20] ss:$8 sps:$4 sm:$0xff]   ;;  %v1358_v49 = vld [vmem:[%s1640_s13 + $0x34] ss:$8 sps:$4 sm:$0xff]  }
  0x26   : > { %v1355_v47 = vld [vmem:[%s1640_s13 + $0x20] ss:$8 sps:$4 sm:$0xff]   ;;  %v1360_v50 = vld [vmem:[%s1626_s23 + $0x30] ss:$8 sps:$4 sm:$0xff]   ;;  %v620_v54 = vsub.s32 0, %v619_v53  ;;  %v624_v57 = vsub.s32 1, %v619_v53 }
  0x27   : > { %552 = vmatpush1.bf16.msra.mxu0 %v1312_v18  ;;  %v1361_v51 = vld [vmem:[%s1640_s13 + $0x30] ss:$8 sps:$4 sm:$0xff]   ;;  %v616_v55 = vld [vmem:[%s1859_s3] sm:$0x3]  ;;  %s1811_s30 = scalar_lea.sflag [#allocation3], %s351_s24  ;;  %s1368_s13 = scalar_lea.vmem %s1367_s22, 4096 }
  0x28   : > { %861 = vmatpush1.bf16.msra.mxu1 %v1313_v19  ;;  %553 = vmatprep.subr.bf16.mxu0 %v1314_v20  ;;  %v925_v56 = vld [vmem:[%s1862_s6] sm:$0x3]  ;;  %v1699_v60 = vrot.slane %v616_v55, %v620_v54  ;;  %v1707_v0 = vrot.slane %v616_v55, %v624_v57  ;;  %p1370_p2 = scmp.lt.s32.totalorder %s1368_s13, %s1362_s20 }
  0x29   : > { %862 = vmatprep.subr.bf16.mxu1 %v1316_v21  ;;  %v644_v58 = vld [vmem:[%s1860_s4] sm:$0x3]  ;;  %v1701_v61 = vrot.slane %v925_v56, %v620_v54  ;;  %v1709_v1 = vrot.slane %v925_v56, %v624_v57 }
  0x2a   : > { %v953_v59 = vld [vmem:[%s1863_s7] sm:$0x3]  ;;  %v1703_v62 = vrot.slane %v644_v58, %v620_v54  ;;  %v1714_v6 = vrot.slane %v644_v58, %v624_v57  ;;  %p1371_p3 = por %p1370_p2, %p1369_p1 }
  0x2b   : > { %554 = vmatpush1.bf16.msra.mxu0 %v1318_v22  ;;  %v1705_v63 = vrot.slane %v953_v59, %v620_v54  ;;  %v1716_v7 = vrot.slane %v953_v59, %v624_v57 }
  0x2c   : > { %863 = vmatpush1.bf16.msra.mxu1 %v1319_v23  ;;  %555 = vmatprep.subr.bf16.mxu0 %v1320_v24  ;;  %p1372_p5 = pnand %p1371_p3, %p1365_p0 }
  0x2d   : > { %864 = vmatprep.subr.bf16.mxu1 %v1322_v25 }
  0x2f   : > { %556 = vmatpush1.bf16.msra.mxu0 %v1324_v26 }
  0x30   : > { %865 = vmatpush1.bf16.msra.mxu1 %v1325_v27  ;;  %557 = vmatprep.subr.bf16.mxu0 %v1326_v28 }
  0x31   : > { %866 = vmatprep.subr.bf16.mxu1 %v1328_v29 }
  0x33   : > { %558 = vmatpush1.bf16.msra.mxu0 %v1330_v32 }
  0x34   : > { %867 = vmatpush1.bf16.msra.mxu1 %v1331_v33  ;;  %573 = vmatprep.subr.bf16.mxu0 %v1332_v34 }
  0x35   : > { %882 = vmatprep.subr.bf16.mxu1 %v1334_v35 }
  0x37   : > { %574 = vmatpush2.bf16.msra.mxu0 %v1336_v36 }
  0x38   : > { %883 = vmatpush2.bf16.msra.mxu1 %v1337_v37 }
  0x3a   : > { %576 = vmatmul.mubr.bf16.vlgmr.msra.gmra.mxu0 %v1338_v38 }
  0x3b   : > { %885 = vmatmul.mubr.bf16.vlgmr.msra.gmra.mxu1 %v1341_v39  ;;  %1186 = vmatprep.mubr.msk.bf16.mxu0 %vm530_vm0, %v1344_v40 }
  0x3c   : > { %1216 = vmatprep.mubr.msk.bf16.mxu1 %vm530_vm0, %v1346_v41 }
  0x42   : > { %586 = vmatmul.mubr.bf16.gmra.mxu0 %v1348_v42 }
  0x43   : > { %895 = vmatmul.mubr.bf16.gmra.mxu1 %v1349_v43  ;;  %1187 = vmatprep.mubr.msk.bf16.mxu0 %vm530_vm0, %v1350_v44 }
  0x44   : > { %1217 = vmatprep.mubr.msk.bf16.mxu1 %vm530_vm0, %v1352_v45 }
  0x4a   : > { %596 = vmatmul.mubr.bf16.gmra.mxu0 %v1354_v46 }
  0x4b   : > { %905 = vmatmul.mubr.bf16.gmra.mxu1 %v1355_v47  ;;  %1188 = vmatprep.mubr.msk.bf16.mxu0 %vm530_vm0, %v1356_v48 }
  0x4c   : > { %1218 = vmatprep.mubr.msk.bf16.mxu1 %vm530_vm0, %v1358_v49 }
  0x52   : > { %606 = vmatmul.mubr.bf16.gmra.mxu0 %v1360_v50 }
  0x53   : > { %915 = vmatmul.mubr.bf16.gmra.mxu1 %v1361_v51 }
  0xfa   : > { %v577_v2 = vpop.f32.mrf.mxu0 }
  0xfb   : > { %v886_v3 = vpop.f32.mrf.mxu1  ;;  %v628_v4 = vmul.f32 %v1699_v60, %v577_v2 }
  0xfc   : > { %v937_v5 = vmul.f32 %v1701_v61, %v886_v3  ;;  %v579_v8 = vpop.f32.mrf.mxu0 }
  0xfd   : > { %v888_v9 = vpop.f32.mrf.mxu1  ;;  %v656_v10 = vadd.f32 %v1703_v62, %v628_v4  ;;  %v629_v12 = vmul.f32 %v1707_v0, %v579_v8 }
  0xfe   : > { %v965_v11 = vadd.f32 %v1705_v63, %v937_v5  ;;  %v938_v13 = vmul.f32 %v1709_v1, %v888_v9  ;;  %v581_v14 = vpop.f32.mrf.mxu0 }
  0xff   : > { %v890_v15 = vpop.f32.mrf.mxu1  ;;  %v672_v16 = vmax.f32 %v656_v10, 0.0  ;;  %v657_v18 = vadd.f32 %v1714_v6, %v629_v12  ;;  %v630_v20 = vmul.f32 %v1699_v60, %v581_v14 }
 0x100   : > { %v981_v17 = vmax.f32 %v965_v11, 0.0  ;;  %v966_v19 = vadd.f32 %v1716_v7, %v938_v13  ;;  %v939_v21 = vmul.f32 %v1701_v61, %v890_v15  ;;  %v583_v22 = vpop.f32.mrf.mxu0 }
 0x101   : > { %v892_v23 = vpop.f32.mrf.mxu1  ;;  %v673_v25 = vmax.f32 %v657_v18, 0.0  ;;  %v631_v27 = vmul.f32 %v1707_v0, %v583_v22  ;;  %v658_v28 = vadd.f32 %v1703_v62, %v630_v20 }
 0x102   : > { %v997_v24 = vadd.f32 %v981_v17, %v672_v16  ;;  %v982_v26 = vmax.f32 %v966_v19, 0.0  ;;  %v967_v29 = vadd.f32 %v1705_v63, %v939_v21  ;;  %v940_v30 = vmul.f32 %v1709_v1, %v892_v23  ;;  %v587_v31 = vpop.f32.mrf.mxu0 }
 0x103   : > { %v896_v32 = vpop.f32.mrf.mxu1  ;;  %v659_v34 = vadd.f32 %v1714_v6, %v631_v27  ;;  %v632_v35 = vmul.f32 %v1699_v60, %v587_v31  ;;  %v674_v37 = vmax.f32 %v658_v28, 0.0 }
 0x104   : > { %1013 = vst [vmem:[%s1732_s26] sm:$0xff] %v997_v24  ;;  %v998_v33 = vadd.f32 %v982_v26, %v673_v25  ;;  %v941_v36 = vmul.f32 %v1701_v61, %v896_v32  ;;  %v983_v38 = vmax.f32 %v967_v29, 0.0  ;;  %v968_v39 = vadd.f32 %v1716_v7, %v940_v30  ;;  %v589_v40 = vpop.f32.mrf.mxu0 }
 0x105   : > { %v898_v41 = vpop.f32.mrf.mxu1  ;;  %v675_v42 = vmax.f32 %v659_v34, 0.0  ;;  %v660_v43 = vadd.f32 %v1703_v62, %v632_v35  ;;  %v633_v45 = vmul.f32 %v1707_v0, %v589_v40 }
 0x106   : > { %1014 = vst [vmem:[%s1732_s26 + $0x8] sm:$0xff] %v998_v33  ;;  %v969_v44 = vadd.f32 %v1705_v63, %v941_v36  ;;  %v999_v46 = vadd.f32 %v983_v38, %v674_v37  ;;  %v984_v47 = vmax.f32 %v968_v39, 0.0  ;;  %v942_v48 = vmul.f32 %v1709_v1, %v898_v41  ;;  %v591_v49 = vpop.f32.mrf.mxu0 }
 0x107   : > { %v900_v50 = vpop.f32.mrf.mxu1  ;;  %v676_v51 = vmax.f32 %v660_v43, 0.0  ;;  %v661_v53 = vadd.f32 %v1714_v6, %v633_v45  ;;  %v634_v54 = vmul.f32 %v1699_v60, %v591_v49 }
 0x108   : > { %v985_v52 = vmax.f32 %v969_v44, 0.0  ;;  %1015 = vst [vmem:[%s1732_s26 + $0x10] sm:$0xff] %v999_v46  ;;  %v1000_v55 = vadd.f32 %v984_v47, %v675_v42  ;;  %v970_v56 = vadd.f32 %v1716_v7, %v942_v48  ;;  %v943_v57 = vmul.f32 %v1701_v61, %v900_v50  ;;  %v593_v58 = vpop.f32.mrf.mxu0 }
 0x109   : > { %v902_v59 = vpop.f32.mrf.mxu1  ;;  %v677_v3 = vmax.f32 %v661_v53, 0.0  ;;  %v662_v4 = vadd.f32 %v1703_v62, %v634_v54  ;;  %v635_v5 = vmul.f32 %v1707_v0, %v593_v58 }
 0x10a   : > { %v1001_v2 = vadd.f32 %v985_v52, %v676_v51  ;;  %1016 = vst [vmem:[%s1732_s26 + $0x18] sm:$0xff] %v1000_v55  ;;  %v986_v8 = vmax.f32 %v970_v56, 0.0  ;;  %v971_v9 = vadd.f32 %v1705_v63, %v943_v57  ;;  %v944_v10 = vmul.f32 %v1709_v1, %v902_v59  ;;  %v597_v11 = vpop.f32.mrf.mxu0 }
 0x10b   : > { %v906_v12 = vpop.f32.mrf.mxu1  ;;  %v678_v13 = vmax.f32 %v662_v4, 0.0  ;;  %v663_v14 = vadd.f32 %v1714_v6, %v635_v5  ;;  %v636_v15 = vmul.f32 %v1699_v60, %v597_v11 }
 0x10c   : > { %1017 = vst [vmem:[%s1732_s26 + $0x20] sm:$0xff] %v1001_v2  ;;  %v945_v16 = vmul.f32 %v1701_v61, %v906_v12  ;;  %v1002_v17 = vadd.f32 %v986_v8, %v677_v3  ;;  %v987_v18 = vmax.f32 %v971_v9, 0.0  ;;  %v972_v19 = vadd.f32 %v1716_v7, %v944_v10  ;;  %v599_v20 = vpop.f32.mrf.mxu0 }
 0x10d   : > { %v908_v21 = vpop.f32.mrf.mxu1  ;;  %v679_v22 = vmax.f32 %v663_v14, 0.0  ;;  %v664_v23 = vadd.f32 %v1703_v62, %v636_v15  ;;  %v637_v25 = vmul.f32 %v1707_v0, %v599_v20 }
 0x10e   : > { %v973_v24 = vadd.f32 %v1705_v63, %v945_v16  ;;  %1018 = vst [vmem:[%s1732_s26 + $0x28] sm:$0xff] %v1002_v17  ;;  %v1003_v26 = vadd.f32 %v987_v18, %v678_v13  ;;  %v988_v27 = vmax.f32 %v972_v19, 0.0  ;;  %v946_v28 = vmul.f32 %v1709_v1, %v908_v21  ;;  %v601_v29 = vpop.f32.mrf.mxu0 }
 0x10f   : > { %v910_v30 = vpop.f32.mrf.mxu1  ;;  %v680_v31 = vmax.f32 %v664_v23, 0.0  ;;  %v665_v33 = vadd.f32 %v1714_v6, %v637_v25  ;;  %v638_v34 = vmul.f32 %v1699_v60, %v601_v29 }
 0x110   : > { %v989_v32 = vmax.f32 %v973_v24, 0.0  ;;  %1019 = vst [vmem:[%s1732_s26 + $0x30] sm:$0xff] %v1003_v26  ;;  %v1004_v35 = vadd.f32 %v988_v27, %v679_v22  ;;  %v974_v36 = vadd.f32 %v1716_v7, %v946_v28  ;;  %v947_v37 = vmul.f32 %v1701_v61, %v910_v30  ;;  %v603_v38 = vpop.f32.mrf.mxu0 }
 0x111   : > { %v912_v39 = vpop.f32.mrf.mxu1  ;;  %v681_v41 = vmax.f32 %v665_v33, 0.0  ;;  %v666_v42 = vadd.f32 %v1703_v62, %v638_v34  ;;  %v639_v43 = vmul.f32 %v1707_v0, %v603_v38 }
 0x112   : > { %v1005_v40 = vadd.f32 %v989_v32, %v680_v31  ;;  %1020 = vst [vmem:[%s1732_s26 + $0x38] sm:$0xff] %v1004_v35  ;;  %v990_v44 = vmax.f32 %v974_v36, 0.0  ;;  %v975_v45 = vadd.f32 %v1705_v63, %v947_v37  ;;  %v948_v46 = vmul.f32 %v1709_v1, %v912_v39  ;;  %v607_v47 = vpop.f32.mrf.mxu0 }
 0x113   : > { %v916_v48 = vpop.f32.mrf.mxu1  ;;  %v682_v49 = vmax.f32 %v666_v42, 0.0  ;;  %v667_v50 = vadd.f32 %v1714_v6, %v639_v43  ;;  %v640_v51 = vmul.f32 %v1699_v60, %v607_v47 }
 0x114   : > { %1021 = vst [vmem:[%s1732_s26 + $0x40] sm:$0xff] %v1005_v40  ;;  %v949_v52 = vmul.f32 %v1701_v61, %v916_v48  ;;  %v1006_v53 = vadd.f32 %v990_v44, %v681_v41  ;;  %v991_v54 = vmax.f32 %v975_v45, 0.0  ;;  %v976_v55 = vadd.f32 %v1716_v7, %v948_v46  ;;  %v609_v56 = vpop.f32.mrf.mxu0 }
 0x115   : > { %v918_v57 = vpop.f32.mrf.mxu1  ;;  %v683_v58 = vmax.f32 %v667_v50, 0.0  ;;  %v668_v59 = vadd.f32 %v1703_v62, %v640_v51  ;;  %v641_v3 = vmul.f32 %v1707_v0, %v609_v56 }
 0x116   : > { %v977_v2 = vadd.f32 %v1705_v63, %v949_v52  ;;  %1022 = vst [vmem:[%s1732_s26 + $0x48] sm:$0xff] %v1006_v53  ;;  %v1007_v4 = vadd.f32 %v991_v54, %v682_v49  ;;  %v992_v5 = vmax.f32 %v976_v55, 0.0  ;;  %v950_v8 = vmul.f32 %v1709_v1, %v918_v57  ;;  %v611_v9 = vpop.f32.mrf.mxu0 }
 0x117   : > { %v920_v10 = vpop.f32.mrf.mxu1  ;;  %v684_v11 = vmax.f32 %v668_v59, 0.0  ;;  %v669_v13 = vadd.f32 %v1714_v6, %v641_v3  ;;  %v642_v14 = vmul.f32 %v1699_v60, %v611_v9 }
 0x118   : > { %v993_v12 = vmax.f32 %v977_v2, 0.0  ;;  %1023 = vst [vmem:[%s1732_s26 + $0x50] sm:$0xff] %v1007_v4  ;;  %v1008_v15 = vadd.f32 %v992_v5, %v683_v58  ;;  %v978_v16 = vadd.f32 %v1716_v7, %v950_v8  ;;  %v951_v17 = vmul.f32 %v1701_v61, %v920_v10  ;;  %v613_v18 = vpop.f32.mrf.mxu0 }
 0x119   : > { %v922_v19 = vpop.f32.mrf.mxu1  ;;  %v685_v21 = vmax.f32 %v669_v13, 0.0  ;;  %v670_v22 = vadd.f32 %v1703_v62, %v642_v14  ;;  %v643_v23 = vmul.f32 %v1707_v0, %v613_v18 }
 0x11a   : > { %v1009_v20 = vadd.f32 %v993_v12, %v684_v11  ;;  %1024 = vst [vmem:[%s1732_s26 + $0x58] sm:$0xff] %v1008_v15  ;;  %v994_v24 = vmax.f32 %v978_v16, 0.0  ;;  %v979_v60 = vadd.f32 %v1705_v63, %v951_v17  ;;  %v952_v25 = vmul.f32 %v1709_v1, %v922_v19 }
 0x11b   : > { %v686_v61 = vmax.f32 %v670_v22, 0.0  ;;  %v671_v26 = vadd.f32 %v1714_v6, %v643_v23 }
 0x11c   : > { %1025 = vst [vmem:[%s1732_s26 + $0x60] sm:$0xff] %v1009_v20  ;;  %v1010_v27 = vadd.f32 %v994_v24, %v685_v21  ;;  %v995_v28 = vmax.f32 %v979_v60, 0.0  ;;  %v980_v62 = vadd.f32 %v1716_v7, %v952_v25 }
 0x11d   : > { %v687_v0 = vmax.f32 %v671_v26, 0.0 }
 0x11e   : > { %1026 = vst [vmem:[%s1732_s26 + $0x68] sm:$0xff] %v1010_v27  ;;  %v1011_v29 = vadd.f32 %v995_v28, %v686_v61  ;;  %v996_v63 = vmax.f32 %v980_v62, 0.0 }
 0x120   : > { %1027 = vst [vmem:[%s1732_s26 + $0x70] sm:$0xff] %v1011_v29  ;;  %v1012_v1 = vadd.f32 %v996_v63, %v687_v0 }
 0x122   : > { %1028 = vst [vmem:[%s1732_s26 + $0x78] sm:$0xff] %v1012_v1 }
 0x123   : > { %1375 = shalt.err (!%p1372_p5)
}
 0x124   : > { %s1376_s23 = scalar_lea.hbm %s1803_s19, 2048  ;;  %s1380_s26 = scalar_lea.hbm %s1864_s8, 4096 }
 0x125   : > { %p1377_p6 = scmp.ne.s32.totalorder %s1803_s19, %s1376_s23  ;;  %p1381_p10 = scmp.lt.s32.totalorder %s1803_s19, %s1864_s8 }
 0x126   : > { %p1382_p11 = scmp.lt.s32.totalorder %s1380_s26, %s1376_s23 }
 0x127   : > { %p1378_p7 = pnand %p1377_p6, %p1528_p4 }
 0x128   : > { %p1383_p12 = por %p1382_p11, %p1381_p10 }
 0x129   : > { %p1379_p9 = pneg %p1378_p7 }
 0x12b   : > { %p1384_p13 = pnand %p1383_p12, %p1379_p9 }
 0x12d   : > { %1387 = shalt.err (!%p1384_p13)
}
 0x12e   : > { %s1441_s16 = smov 256   ;;  %s1442_s20 = smov 16  }
 0x12f   : > { %1227 = dma.vmem_to_hbm [thread:$0]  (%p1528_p4), %s1805_s12, 2048, %s1803_s19, %s1811_s30, %s1441_s16, %s1441_s16, %s1442_s20  }
 0x130 PF: > { %p1233_p0 = scmp.ge.s32.totalorder %s1438_s10, 2  ;;  %s1061_s21 = sand.u32 1, %s1418_s27  }
 0x131   : > { %s1062_s22 = scalar_lea.sflag [#allocation3], %s1061_s21 }
 0x132   : > { %p1230_p1 = pnand %p1233_p0, %p1535_p8 }
 0x134   : > { %p1231_p2 = pneg %p1230_p1 }
 0x136   : > { %1413 = dma.done.wait (%p1231_p2), %s1062_s22, 2048  }
 0x137   : > { %1415 = vsyncadd (%p1231_p2), %s1062_s22, 4294965248  ;;  %s21_s10 = sadd.s32 1, %s1438_s10   ;;  %s1869_s15 = sld [smem:[#allocation5_spill]] }
 0x138   : > { %p18_p3 = scmp.ge.s32.totalorder %s21_s10, 4   ;;  %s1870_s27 = smov %s1422_s28 }
 0x139   : > { %s1871_s28 = smov %s1426_s29  ;;  %s1872_s29 = smov %s1541_s18 }
 0x13a   : > { %s1873_s30 = smov %s1434_s9  ;;  %20 = sbr.rel (!%p18_p3) target bundleno = 4 (0x4), region = 90 }
 0x13d   : > { %s1874_s9 = smov %s1869_s15 }
 0x13f   :  { %1067 = vsyncpa [#allocation3], 1 }
 0x140   :  { %1069 = vsyncpa [#allocation3 + $0x1], 1 }

</bundles_post_ra>
